<compile_context>
chip_gen: v7x
topology: tpu7x:2x2x1
jax: 0.10.0
libtpu: 0.0.40
codegen_flags: <defaults>
</compile_context>

<pallas_src>
import jax
import jax.numpy as jnp
from jax.experimental import pallas as pl
from jax.experimental.pallas import tpu as pltpu


def _sobel_edge_planes(x):
    """Valid 3x3 Sobel edge magnitude, batched over the leading axis.

    x: (N, H, W) float32 -> (N, H-2, W-2) float32.
    Separable form:
      gx = horizontal diff [-1,0,1] of vertical smooth [1,2,1]
      gy = vertical   diff [-1,0,1] of horizontal smooth [1,2,1]
    (signs are irrelevant for the magnitude).
    """
    Ho = x.shape[1] - 2
    Wo = x.shape[2] - 2
    # vertical [1,2,1] smooth -> (N, Ho, W)
    sv = x[:, 0:Ho, :] + 2.0 * x[:, 1:Ho + 1, :] + x[:, 2:Ho + 2, :]
    # horizontal central difference -> gx: (N, Ho, Wo)
    gx = sv[:, :, 2:Wo + 2] - sv[:, :, 0:Wo]
    # horizontal [1,2,1] smooth -> (N, H, Wo)
    sh = x[:, :, 0:Wo] + 2.0 * x[:, :, 1:Wo + 1] + x[:, :, 2:Wo + 2]
    # vertical central difference -> gy: (N, Ho, Wo)
    gy = sh[:, 2:Ho + 2, :] - sh[:, 0:Ho, :]
    return jnp.sqrt(gx * gx + gy * gy)


def _edge_loss_block_kernel(pred_ref, targ_ref, psum_ref):
    # pred_ref / targ_ref: (TB, H, W) VMEM blocks in their *native* dtype.
    # psum_ref: (1, 1, 1) f32 per-block partial-sum output (distinct block per
    # grid step -> no cross-step state, grid axis can be "parallel").
    p = pred_ref[...].astype(jnp.float32)
    t = targ_ref[...].astype(jnp.float32)
    diff = jnp.abs(_sobel_edge_planes(p) - _sobel_edge_planes(t))
    psum_ref[...] = jnp.sum(diff, keepdims=True)


# Per-input VMEM block budget in f32-equivalent bytes.  Chosen against v7x's
# smaller VMEM (64 MiB physical / 32 MiB default scoped): 2 inputs x 2 pipeline
# buffers plus in-kernel f32 intermediates stays comfortably under 32 MiB.
_BLOCK_BUDGET_BYTES = 2 * 1024 * 1024


def edge_aware_loss(pred, target, *, block_planes=None):
    """Pallas implementation of EdgeAwareLoss.forward (returns scalar f32)."""
    if pred.ndim == 3:
        pred = pred[None]
    if target.ndim == 3:
        target = target[None]

    B, C, H, W = pred.shape
    BC = B * C

    # Keep native dtype (bf16 inputs halve HBM->VMEM DMA bytes); the kernel
    # up-casts to f32 internally.
    pred_p = pred.reshape(BC, H, W)
    targ_p = target.reshape(BC, H, W)

    if block_planes is None:
        tb = max(1, _BLOCK_BUDGET_BYTES // (H * W * 4))
    else:
        tb = max(1, int(block_planes))
    tb = min(tb, BC)
    # TODO(synk): very large planes (H*W*4 >> 2 MiB, e.g. 4K frames) would need
    # an additional spatial H-tile axis with a 2-row halo to fit v7x VMEM.

    num_blocks = -(-BC // tb)
    padded = num_blocks * tb
    if padded != BC:
        # Zero-padded planes contribute exactly 0 to the edge-L1 sum (their
        # pred/target edge maps are both identically zero), so this is safe.
        pad = padded - BC
        pred_p = jnp.concatenate(
            [pred_p, jnp.zeros((pad, H, W), pred_p.dtype)], axis=0)
        targ_p = jnp.concatenate(
            [targ_p, jnp.zeros((pad, H, W), targ_p.dtype)], axis=0)

    in_spec = pl.BlockSpec((tb, H, W), lambda i: (i, 0, 0))
    out_spec = pl.BlockSpec((1, 1, 1), lambda i: (i, 0, 0))

    partials = pl.pallas_call(
        _edge_loss_block_kernel,
        out_shape=jax.ShapeDtypeStruct((num_blocks, 1, 1), jnp.float32),
        grid_spec=pltpu.PrefetchScalarGridSpec(
            num_scalar_prefetch=0,
            grid=(num_blocks,),
            in_specs=[in_spec, in_spec],
            out_specs=out_spec,
        ),
        compiler_params=pltpu.CompilerParams(
            dimension_semantics=("parallel",),
            vmem_limit_bytes=32 * 1024 * 1024,
        ),
    )(pred_p, targ_p)

    count = BC * (H - 2) * (W - 2)
    return jnp.sum(partials) / jnp.float32(count)


def _edge_loss_reference(pred, target):
    """Pure-JAX reference (direct 8-slice Sobel) for a sanity check."""
    if pred.ndim == 3:
        pred = pred[None]
    if target.ndim == 3:
        target = target[None]
    B, C, H, W = pred.shape
    p = pred.reshape(B * C, H, W).astype(jnp.float32)
    t = target.reshape(B * C, H, W).astype(jnp.float32)

    def sobel(x):
        Ho, Wo = x.shape[0] - 2, x.shape[1] - 2

        def s(di, dj):
            return x[di:di + Ho, dj:dj + Wo]

        gx = (-s(0, 0) + s(0, 2)
              - 2.0 * s(1, 0) + 2.0 * s(1, 2)
              - s(2, 0) + s(2, 2))
        gy = (-s(0, 0) - 2.0 * s(0, 1) - s(0, 2)
              + s(2, 0) + 2.0 * s(2, 1) + s(2, 2))
        return jnp.sqrt(gx * gx + gy * gy)

    pe = jax.vmap(sobel)(p)
    te = jax.vmap(sobel)(t)
    return jnp.mean(jnp.abs(pe - te))


if __name__ == "__main__":
    key = jax.random.PRNGKey(0)
    k1, k2 = jax.random.split(key)
    B, C, H, W = 2, 4, 16, 16
    pred = jax.random.normal(k1, (B, C, H, W), dtype=jnp.float32)
    target = jax.random.normal(k2, (B, C, H, W), dtype=jnp.float32)

    ref = jax.block_until_ready(_edge_loss_reference(pred, target))

    # Single-block path (all 8 planes in one grid step).
    loss = jax.block_until_ready(edge_aware_loss(pred, target))
    assert jnp.allclose(loss, ref, rtol=1e-5, atol=1e-5), (loss, ref)

    # Multi-block + padding path (3 planes per block -> 3 blocks, 1 zero-pad
    # plane) exercising the "parallel" per-block partial-sum output.
    loss_mb = jax.block_until_ready(
        edge_aware_loss(pred, target, block_planes=3))
    assert jnp.allclose(loss_mb, ref, rtol=1e-5, atol=1e-5), (loss_mb, ref)

    # Native bf16 inputs (kernel DMAs bf16 blocks, accumulates in f32).
    pred_bf = pred.astype(jnp.bfloat16)
    targ_bf = target.astype(jnp.bfloat16)
    ref_bf = jax.block_until_ready(_edge_loss_reference(pred_bf, targ_bf))
    loss_bf = jax.block_until_ready(edge_aware_loss(pred_bf, targ_bf))
    assert jnp.allclose(loss_bf, ref_bf, rtol=1e-3, atol=1e-3), (loss_bf, ref_bf)

    print("KERNEL_OK")
</pallas_src>

<mosaic_0001>
module attributes {stable_mosaic.version = 11 : i64} {
  func.func @_edge_loss_block_kernel(%arg0: i32, %arg1: memref<8x16x16xf32, #tpu.memory_space<vmem>>, %arg2: memref<8x16x16xf32, #tpu.memory_space<vmem>>, %arg3: memref<1x1x1xf32, #tpu.memory_space<vmem>>) attributes {dimension_semantics = [#tpu.dimension_semantics<parallel>], iteration_bounds = array<i64: 1>, scalar_prefetch = 0 : i64, scratch_operands = 0 : i64, tpu.core_type = #tpu.core_type<tc>, window_params = [{transform_indices = @transform_0, window_bounds = array<i64: 8, 16, 16>}, {transform_indices = @transform_1, window_bounds = array<i64: 8, 16, 16>}, {transform_indices = @transform_2, window_bounds = array<i64: 1, 1, 1>}]} {
    %c0 = arith.constant 0 : index
    %c0_0 = arith.constant 0 : index
    %c0_1 = arith.constant 0 : index
    %0 = vector.load %arg1[%c0, %c0_0, %c0_1] : memref<8x16x16xf32, #tpu.memory_space<vmem>>, vector<8x16x16xf32>
    %c0_2 = arith.constant 0 : index
    %c0_3 = arith.constant 0 : index
    %c0_4 = arith.constant 0 : index
    %1 = vector.load %arg2[%c0_2, %c0_3, %c0_4] : memref<8x16x16xf32, #tpu.memory_space<vmem>>, vector<8x16x16xf32>
    %2 = vector.extract_strided_slice %0 {offsets = [0, 0, 0], sizes = [8, 14, 16], strides = [1, 1, 1]} : vector<8x16x16xf32> to vector<8x14x16xf32>
    %3 = vector.extract_strided_slice %0 {offsets = [0, 1, 0], sizes = [8, 14, 16], strides = [1, 1, 1]} : vector<8x16x16xf32> to vector<8x14x16xf32>
    %cst = arith.constant 2.000000e+00 : f32
    %4 = vector.broadcast %cst : f32 to vector<8x14x16xf32>
    %5 = arith.mulf %4, %3 : vector<8x14x16xf32>
    %6 = arith.addf %2, %5 : vector<8x14x16xf32>
    %7 = vector.extract_strided_slice %0 {offsets = [0, 2, 0], sizes = [8, 14, 16], strides = [1, 1, 1]} : vector<8x16x16xf32> to vector<8x14x16xf32>
    %8 = arith.addf %6, %7 : vector<8x14x16xf32>
    %9 = vector.extract_strided_slice %8 {offsets = [0, 0, 2], sizes = [8, 14, 14], strides = [1, 1, 1]} : vector<8x14x16xf32> to vector<8x14x14xf32>
    %10 = vector.extract_strided_slice %8 {offsets = [0, 0, 0], sizes = [8, 14, 14], strides = [1, 1, 1]} : vector<8x14x16xf32> to vector<8x14x14xf32>
    %11 = arith.subf %9, %10 : vector<8x14x14xf32>
    %12 = vector.extract_strided_slice %0 {offsets = [0, 0, 0], sizes = [8, 16, 14], strides = [1, 1, 1]} : vector<8x16x16xf32> to vector<8x16x14xf32>
    %13 = vector.extract_strided_slice %0 {offsets = [0, 0, 1], sizes = [8, 16, 14], strides = [1, 1, 1]} : vector<8x16x16xf32> to vector<8x16x14xf32>
    %cst_5 = arith.constant 2.000000e+00 : f32
    %14 = vector.broadcast %cst_5 : f32 to vector<8x16x14xf32>
    %15 = arith.mulf %14, %13 : vector<8x16x14xf32>
    %16 = arith.addf %12, %15 : vector<8x16x14xf32>
    %17 = vector.extract_strided_slice %0 {offsets = [0, 0, 2], sizes = [8, 16, 14], strides = [1, 1, 1]} : vector<8x16x16xf32> to vector<8x16x14xf32>
    %18 = arith.addf %16, %17 : vector<8x16x14xf32>
    %19 = vector.extract_strided_slice %18 {offsets = [0, 2, 0], sizes = [8, 14, 14], strides = [1, 1, 1]} : vector<8x16x14xf32> to vector<8x14x14xf32>
    %20 = vector.extract_strided_slice %18 {offsets = [0, 0, 0], sizes = [8, 14, 14], strides = [1, 1, 1]} : vector<8x16x14xf32> to vector<8x14x14xf32>
    %21 = arith.subf %19, %20 : vector<8x14x14xf32>
    %22 = arith.mulf %11, %11 : vector<8x14x14xf32>
    %23 = arith.mulf %21, %21 : vector<8x14x14xf32>
    %24 = arith.addf %22, %23 : vector<8x14x14xf32>
    %25 = math.sqrt %24 : vector<8x14x14xf32>
    %26 = vector.extract_strided_slice %1 {offsets = [0, 0, 0], sizes = [8, 14, 16], strides = [1, 1, 1]} : vector<8x16x16xf32> to vector<8x14x16xf32>
    %27 = vector.extract_strided_slice %1 {offsets = [0, 1, 0], sizes = [8, 14, 16], strides = [1, 1, 1]} : vector<8x16x16xf32> to vector<8x14x16xf32>
    %cst_6 = arith.constant 2.000000e+00 : f32
    %28 = vector.broadcast %cst_6 : f32 to vector<8x14x16xf32>
    %29 = arith.mulf %28, %27 : vector<8x14x16xf32>
    %30 = arith.addf %26, %29 : vector<8x14x16xf32>
    %31 = vector.extract_strided_slice %1 {offsets = [0, 2, 0], sizes = [8, 14, 16], strides = [1, 1, 1]} : vector<8x16x16xf32> to vector<8x14x16xf32>
    %32 = arith.addf %30, %31 : vector<8x14x16xf32>
    %33 = vector.extract_strided_slice %32 {offsets = [0, 0, 2], sizes = [8, 14, 14], strides = [1, 1, 1]} : vector<8x14x16xf32> to vector<8x14x14xf32>
    %34 = vector.extract_strided_slice %32 {offsets = [0, 0, 0], sizes = [8, 14, 14], strides = [1, 1, 1]} : vector<8x14x16xf32> to vector<8x14x14xf32>
    %35 = arith.subf %33, %34 : vector<8x14x14xf32>
    %36 = vector.extract_strided_slice %1 {offsets = [0, 0, 0], sizes = [8, 16, 14], strides = [1, 1, 1]} : vector<8x16x16xf32> to vector<8x16x14xf32>
    %37 = vector.extract_strided_slice %1 {offsets = [0, 0, 1], sizes = [8, 16, 14], strides = [1, 1, 1]} : vector<8x16x16xf32> to vector<8x16x14xf32>
    %cst_7 = arith.constant 2.000000e+00 : f32
    %38 = vector.broadcast %cst_7 : f32 to vector<8x16x14xf32>
    %39 = arith.mulf %38, %37 : vector<8x16x14xf32>
    %40 = arith.addf %36, %39 : vector<8x16x14xf32>
    %41 = vector.extract_strided_slice %1 {offsets = [0, 0, 2], sizes = [8, 16, 14], strides = [1, 1, 1]} : vector<8x16x16xf32> to vector<8x16x14xf32>
    %42 = arith.addf %40, %41 : vector<8x16x14xf32>
    %43 = vector.extract_strided_slice %42 {offsets = [0, 2, 0], sizes = [8, 14, 14], strides = [1, 1, 1]} : vector<8x16x14xf32> to vector<8x14x14xf32>
    %44 = vector.extract_strided_slice %42 {offsets = [0, 0, 0], sizes = [8, 14, 14], strides = [1, 1, 1]} : vector<8x16x14xf32> to vector<8x14x14xf32>
    %45 = arith.subf %43, %44 : vector<8x14x14xf32>
    %46 = arith.mulf %35, %35 : vector<8x14x14xf32>
    %47 = arith.mulf %45, %45 : vector<8x14x14xf32>
    %48 = arith.addf %46, %47 : vector<8x14x14xf32>
    %49 = math.sqrt %48 : vector<8x14x14xf32>
    %50 = arith.subf %25, %49 : vector<8x14x14xf32>
    %51 = math.absf %50 : vector<8x14x14xf32>
    %52 = vector.shape_cast %51 : vector<8x14x14xf32> to vector<1x8x14x14xf32>
    %cst_8 = arith.constant dense<0.000000e+00> : vector<1xf32>
    %53 = vector.multi_reduction <add>, %52, %cst_8 [1, 2, 3] : vector<1x8x14x14xf32> to vector<1xf32>
    %54 = vector.shape_cast %53 : vector<1xf32> to vector<1x1x1x1xf32>
    %55 = vector.extract %54[0, 0, 0, 0] : f32 from vector<1x1x1x1xf32>
    %56 = vector.broadcast %55 : f32 to vector<1x1x1xf32>
    %c0_9 = arith.constant 0 : index
    %c0_10 = arith.constant 0 : index
    %c0_11 = arith.constant 0 : index
    %57 = vector.load %arg3[%c0_9, %c0_10, %c0_11] : memref<1x1x1xf32, #tpu.memory_space<vmem>>, vector<1x1x1xf32>
    tpu.vector_store %arg3[%c0_9, %c0_10, %c0_11], %56 {strides = array<i32>} : memref<1x1x1xf32, #tpu.memory_space<vmem>>, vector<1x1x1xf32>,
    return
  }
  func.func @transform_0(%arg0: i32) -> (i32, i32, i32) {
    %c0_i32 = arith.constant 0 : i32
    %c0_i32_0 = arith.constant 0 : i32
    %c0_i32_1 = arith.constant 0 : i32
    return %arg0, %c0_i32, %c0_i32_0 : i32, i32, i32
  }
  func.func @transform_1(%arg0: i32) -> (i32, i32, i32) {
    %c0_i32 = arith.constant 0 : i32
    %c0_i32_0 = arith.constant 0 : i32
    %c0_i32_1 = arith.constant 0 : i32
    return %arg0, %c0_i32, %c0_i32_0 : i32, i32, i32
  }
  func.func @transform_2(%arg0: i32) -> (i32, i32, i32) {
    %c0_i32 = arith.constant 0 : i32
    %c0_i32_0 = arith.constant 0 : i32
    %c0_i32_1 = arith.constant 0 : i32
    return %arg0, %c0_i32, %c0_i32_0 : i32, i32, i32
  }
}

</mosaic_0001>

<bundles_post_ra>
// kernel: tpu_custom_call.1
= control target key start
LH: loop header
LB: loop body
LE: loop exit
PB: predicated region body
PF: predicated region fallthrough
CT: control target
= control target key end

     0   :  { %7 = vsyncpa [#allocation3], 0  ;;  %s2716_s0 = inlined_call_operand.hbm [shape: f32[8,16,16], index: 0, kind: input, shape index: {}]   ;;  %s2717_s1 = inlined_call_operand.hbm [shape: f32[8,16,16], index: 1, kind: input, shape index: {}]   ;;  %s2718_s2 = inlined_call_operand.hbm [shape: f32[1,1,1], index: 2, kind: output, shape index: {}]  }
   0x1   :  { %8 = vsyncpa [#allocation6], 0 }
   0x2   :  { %9 = vsyncpa [#allocation4], 0  ;;  %s1754_s9 = smov [#allocation2]   ;;  %s1682_s13 = scalar_lea.hbm %s2716_s0, 2048 }
   0x3   :  { %s15_s10 = sshll.u32 %s1754_s9, 4  ;;  %p1683_p0 = scmp.ne.s32.totalorder %s2716_s0, %s1682_s13  ;;  %s16_s10 = int_to_ptr.vmem [resolvable:$true] %s15_s10 }
   0x4   :  { %p1686_p1 = scmp.lt.u32.totalorder %s1682_s13, %s2716_s0 }
   0x6   :  { %p1688_p2 = pnand %p1686_p1, %p1683_p0 }
   0x8   :  { %1691 = shalt.err (!%p1688_p2)
}
   0x9   :  { %s1692_s18 = scalar_lea.vmem %s16_s10, 2048  ;;  %p1697_p4 = scmp.lt.s32.totalorder %s16_s10, %s16_s10 }
   0xa   :  { %p1693_p3 = scmp.ne.s32.totalorder %s16_s10, %s1692_s18  ;;  %p1698_p5 = scmp.lt.s32.totalorder %s1692_s18, %s1692_s18 }
   0xc   :  { %p1699_p6 = por %p1698_p5, %p1697_p4 }
   0xe   :  { %p1700_p7 = pnand %p1699_p6, %p1693_p3 }
  0x10   :  { %1703 = shalt.err (!%p1700_p7)
}
  0x11   :  { %s1755_s19 = smov 128   ;;  %s1756_s20 = smov 8  }
  0x12   :  { %21 = dma.hbm_to_vmem [thread:$0]  %s2716_s0, 2048, %s16_s10, [#allocation3], %s1755_s19, %s1755_s19, %s1756_s20  }
  0x13   :  { %s1757_s23 = smov [#allocation5]   ;;  %s1704_s27 = scalar_lea.hbm %s2717_s1, 2048 }
  0x14   :  { %s27_s24 = sshll.u32 %s1757_s23, 4  ;;  %p1705_p8 = scmp.ne.s32.totalorder %s2717_s1, %s1704_s27  ;;  %s28_s24 = int_to_ptr.vmem [resolvable:$true] %s27_s24 }
  0x15   :  { %p1708_p9 = scmp.lt.u32.totalorder %s1704_s27, %s2717_s1 }
  0x17   :  { %p1710_p10 = pnand %p1708_p9, %p1705_p8 }
  0x19   :  { %1713 = shalt.err (!%p1710_p10)
}
  0x1a   :  { %s1714_s4 = scalar_lea.vmem %s28_s24, 2048  ;;  %p1719_p12 = scmp.lt.s32.totalorder %s28_s24, %s28_s24 }
  0x1b   :  { %p1715_p11 = scmp.ne.s32.totalorder %s28_s24, %s1714_s4  ;;  %p1720_p13 = scmp.lt.s32.totalorder %s1714_s4, %s1714_s4 }
  0x1d   :  { %p1721_p0 = por %p1720_p13, %p1719_p12 }
  0x1f   :  { %p1722_p1 = pnand %p1721_p0, %p1715_p11 }
  0x21   :  { %1725 = shalt.err (!%p1722_p1)
}
  0x22   :  { %33 = dma.hbm_to_vmem [thread:$0]  %s2717_s1, 2048, %s28_s24, [#allocation6], %s1755_s19, %s1755_s19, %s1756_s20  }
  0x23   :  { %1748 = dma.done.wait [#allocation3], 2048  }
  0x24   :  { %1749 = vsyncadd [#allocation3], 4294965248 }
  0x25   :  { %1750 = dma.done.wait [#allocation6], 2048  }
  0x26   :  { %1751 = vsyncadd [#allocation6], 4294965248  ;;  %v1801_v0 = vld [vmem:[#allocation5] sm:$0xff]  ;;  %v1805_v2 = vld [vmem:[#allocation5 + $0x8] sm:$0xff]  ;;  %s1758_s6 = smov 127   ;;  %s1759_s1 = smov 126  }
  0x27   :  { %v1803_v1 = vld [vmem:[#allocation2] sm:$0xff]  ;;  %v763_v3 = vmul.f32 2.0, %v1801_v0  ;;  %v1809_v5 = vld [vmem:[#allocation2 + $0x8] sm:$0xff]  ;;  %v1814_v6 = vmul.f32 2.0, %v1805_v2  ;;  %v1819_v8 = vld [vmem:[#allocation2 + $0x18] sm:$0xff]  ;;  %vm104_vm0 = vcmask 1046528  }
  0x28   :  { %v72_v4 = vmul.f32 2.0, %v1803_v1  ;;  %v1817_v7 = vmul.f32 2.0, %v1809_v5  ;;  %v1821_v9 = vld [vmem:[#allocation2 + $0x10] sm:$0xff]  ;;  %v1828_v10 = vmul.f32 2.0, %v1819_v8  ;;  %v1834_v12 = vld [vmem:[#allocation5 + $0x18] sm:$0xff]  ;;  %v1848_v20 = vld [vmem:[#allocation2 + $0x28] sm:$0xff] }
  0x29   :  { %1003 = vrot.lane.b32.xlu1 %v763_v3, %s1758_s6  ;;  %v74_v11 = vmul.f32 2.0, %v1821_v9  ;;  %v1836_v13 = vld [vmem:[#allocation5 + $0x10] sm:$0xff]  ;;  %v1844_v16 = vmul.f32 2.0, %v1834_v12  ;;  %v795_v18 = vrot.slane %v763_v3, 1  ;;  %v2727_v19 = vrot.slane %v1814_v6, 1  ;;  %v1850_v21 = vld [vmem:[#allocation2 + $0x20] sm:$0xff] }
  0x2a   :  { %314 = vrot.lane.b32.xlu0 %v72_v4, %s1758_s6  ;;  %v105_v14 = vrot.slane %v72_v4, 1  ;;  %v2728_v15 = vrot.slane %v1817_v7, 1  ;;  %v765_v17 = vmul.f32 2.0, %v1836_v13  ;;  %v1853_v24 = vld [vmem:[#allocation5 + $0x28] sm:$0xff]  ;;  %v1858_v25 = vld [vmem:[#allocation5 + $0x20] sm:$0xff]  ;;  %v2726_v27 = vrot.slane %v1828_v10, 1 }
  0x2b   :  { %v2725_v22 = vrot.slane %v1844_v16, 1  ;;  %v108_v28 = vrot.slane %v74_v11, 1  ;;  %v1867_v29 = vmul.f32 2.0, %v1848_v20  ;;  %v76_v30 = vmul.f32 2.0, %v1850_v21  ;;  %v1913_v42 = vld [vmem:[#allocation2 + $0x38] sm:$0xff]  ;;  %v1915_v43 = vld [vmem:[#allocation2 + $0x30] sm:$0xff] }
  0x2c   :  { %v798_v23 = vrot.slane %v765_v17, 1  ;;  %v1863_v26 = vsel %vm104_vm0, %v105_v14, %v2728_v15  ;;  %v1871_v31 = vmul.f32 2.0, %v1853_v24  ;;  %v1876_v32 = vsel %vm104_vm0, %v795_v18, %v2727_v19  ;;  %v1924_v46 = vld [vmem:[#allocation5 + $0x38] sm:$0xff]  ;;  %v1926_v47 = vld [vmem:[#allocation5 + $0x30] sm:$0xff]  ;;  %v1955_v56 = vld [vmem:[#allocation2 + $0x48] sm:$0xff]  ;;  %s1760_s7 = smov 2  }
  0x2d   :  { %1005 = vrot.lane.b32.xlu1 %v1814_v6, %s1758_s6  ;;  %v2724_v33 = vrot.slane %v1867_v29, 1  ;;  %v111_v34 = vrot.slane %v76_v30, 1  ;;  %v767_v35 = vmul.f32 2.0, %v1858_v25  ;;  %v1893_v39 = vsel %vm104_vm0, %v108_v28, %v2726_v27  ;;  %v1957_v57 = vld [vmem:[#allocation2 + $0x40] sm:$0xff]  ;;  %v1966_v60 = vld [vmem:[#allocation5 + $0x48] sm:$0xff]  ;;  %v2009_v28 = vld [vmem:[#allocation2 + $0x50] sm:$0xff] }
  0x2e   :  { %316 = vrot.lane.b32.xlu0 %v1817_v7, %s1758_s6  ;;  %v1883_v36 = vsel %vm104_vm0, %v798_v23, %v2725_v22  ;;  %v2723_v37 = vrot.slane %v1871_v31, 1  ;;  %v1918_v44 = vmul.f32 2.0, %v1913_v42  ;;  %v78_v45 = vmul.f32 2.0, %v1915_v43  ;;  %v1968_v61 = vld [vmem:[#allocation5 + $0x40] sm:$0xff]  ;;  %v2007_v23 = vld [vmem:[#allocation2 + $0x58] sm:$0xff]  ;;  %2768 = vst [vmem:[#allocation12_spill] sm:$0xff] %v2009_v28 }
  0x2f   :  { %v801_v38 = vrot.slane %v767_v35, 1  ;;  %v1898_v40 = vsel %vm104_vm0, %v111_v34, %v2724_v33  ;;  %v1930_v50 = vmul.f32 2.0, %v1924_v46  ;;  %v769_v51 = vmul.f32 2.0, %v1926_v47  ;;  %2767 = vst [vmem:[#allocation11_spill] sm:$0xff] %v2007_v23  ;;  %v2093_v22 = vld [vmem:[#allocation5 + $0x78] sm:$0xff]  ;;  %v2095_v27 = vld [vmem:[#allocation5 + $0x70] sm:$0xff] }
  0x30   :  { %v2722_v48 = vrot.slane %v1918_v44, 1  ;;  %v114_v49 = vrot.slane %v78_v45, 1  ;;  %v1960_v58 = vmul.f32 2.0, %v1955_v56  ;;  %v80_v59 = vmul.f32 2.0, %v1957_v57  ;;  %2784 = vst [vmem:[#allocation28_spill] sm:$0xff] %v2093_v22  ;;  %2785 = vst [vmem:[#allocation29_spill] sm:$0xff] %v2095_v27 }
  0x31   :  { %320 = vrot.lane.b32.xlu1 %v1828_v10, %s1758_s6  ;;  %v1907_v41 = vsel %vm104_vm0, %v801_v38, %v2723_v37  ;;  %v2721_v52 = vrot.slane %v1930_v50, 1  ;;  %v804_v53 = vrot.slane %v769_v51, 1  ;;  %v1972_v3 = vmul.f32 2.0, %v1966_v60  ;;  %v2023_v38 = vld [vmem:[#allocation5 + $0x50] sm:$0xff]  ;;  %s1761_s8 = smov [#allocation7]  }
  0x32   :  { %318 = vrot.lane.b32.xlu0 %v74_v11, %s1758_s6  ;;  %v1940_v54 = vsel %vm104_vm0, %v114_v49, %v2722_v48  ;;  %v2720_v62 = vrot.slane %v1960_v58, 1  ;;  %v117_v63 = vrot.slane %v80_v59, 1  ;;  %v771_v4 = vmul.f32 2.0, %v1968_v61  ;;  %2770 = vst [vmem:[#allocation14_spill] sm:$0xff] %v2023_v38  ;;  %v2081_v48 = vld [vmem:[#allocation2 + $0x70] sm:$0xff]  ;;  %s1598_s9 = sshll.u32 %s1761_s8, 4  ;;  %s1599_s9 = int_to_ptr.vmem [resolvable:$true] %s1598_s9 }
  0x33   :  { %v1949_v55 = vsel %vm104_vm0, %v804_v53, %v2721_v52  ;;  %v2719_v11 = vrot.slane %v1972_v3, 1  ;;  %v2019_v34 = vmul.f32 2.0, %v2009_v28  ;;  %v2033_v49 = vmul.f32 2.0, %v2023_v38  ;;  %v2045_v53 = vld [vmem:[#allocation2 + $0x60] sm:$0xff]  ;;  %v2079_v52 = vld [vmem:[#allocation2 + $0x78] sm:$0xff]  ;;  %2781 = vst [vmem:[#allocation25_spill] sm:$0xff] %v2081_v48  ;;  %p1731_p3 = scmp.lt.s32.totalorder %s1599_s9, %s1599_s9 }
  0x34   :  { %v807_v14 = vrot.slane %v771_v4, 1  ;;  %2773 = vst [vmem:[#allocation17_spill] sm:$0xff] %v2045_v53  ;;  %2780 = vst [vmem:[#allocation24_spill] sm:$0xff] %v2079_v52  ;;  %v2088_v37 = vmul.f32 2.0, %v2079_v52  ;;  %v2091_v33 = vmul.f32 2.0, %v2081_v48  ;;  %v2102_v19 = vmul.f32 2.0, %v2093_v22 }
  0x35   :  { %380 = vrot.lane.b32.xlu1 %v1809_v5, %s1759_s1  ;;  %2771 = vst [vmem:[#allocation15_spill] sm:$0xff] %v2033_v49  ;;  %v2105_v15 = vmul.f32 2.0, %v2095_v27  ;;  %vm177_vm1 = vcmask 1045504   ;;  %vm458_vm2 = vcmask 1041408   ;;  %s1726_s11 = scalar_lea.vmem %s1599_s9, 16  ;;  %s1730_s12 = scalar_lea.vmem %s1599_s9, 32 }
  0x36   :  { %378 = vrot.lane.b32.xlu0 %v1803_v1, %s1759_s1  ;;  %v1991_v18 = vsel %vm104_vm0, %v807_v14, %v2719_v11  ;;  %v2059_v14 = vld [vmem:[#allocation5 + $0x60] sm:$0xff]  ;;  %2782 = vst [vmem:[#allocation26_spill] sm:$0xff] %v2088_v37  ;;  %2783 = vst [vmem:[#allocation27_spill] sm:$0xff] %v2091_v33  ;;  %p1727_p2 = scmp.ne.s32.totalorder %s1599_s9, %s1726_s11  ;;  %p1732_p4 = scmp.lt.s32.totalorder %s1730_s12, %s1726_s11 }
  0x37   :  { %2777 = vst [vmem:[#allocation21_spill] sm:$0xff] %v2059_v14  ;;  %2786 = vst [vmem:[#allocation30_spill] sm:$0xff] %v2102_v19 }
  0x38   :  { %2787 = vst [vmem:[#allocation31_spill] sm:$0xff] %v2105_v15  ;;  %p1733_p5 = por %p1732_p4, %p1731_p3 }
  0x39   :  { %1009 = vrot.lane.b32.xlu1 %v1844_v16, %s1758_s6 }
  0x3a   :  { %1007 = vrot.lane.b32.xlu0 %v765_v17, %s1758_s6  ;;  %v1982_v17 = vsel %vm104_vm0, %v117_v63, %v2720_v62  ;;  %v2055_v63 = vmul.f32 2.0, %v2045_v53  ;;  %v2069_v62 = vmul.f32 2.0, %v2059_v14  ;;  %p1734_p6 = pnand %p1733_p5, %p1727_p2 }
  0x3c   :  { %2775 = vst [vmem:[#allocation19_spill] sm:$0xff] %v2055_v63  ;;  %2779 = vst [vmem:[#allocation23_spill] sm:$0xff] %v2069_v62 }
  0x3d   :  { %1069 = vrot.lane.b32.xlu1 %v1805_v2, %s1759_s1 }
  0x3e   :  { %1067 = vrot.lane.b32.xlu0 %v1801_v0, %s1759_s1 }
  0x41   :  { %384 = vrot.lane.b32.xlu1 %v1819_v8, %s1759_s1 }
  0x42   :  { %382 = vrot.lane.b32.xlu0 %v1821_v9, %s1759_s1 }
  0x45   :  { %1073 = vrot.lane.b32.xlu1 %v1834_v12, %s1759_s1 }
  0x46   :  { %1071 = vrot.lane.b32.xlu0 %v1836_v13, %s1759_s1 }
  0x49   :  { %324 = vrot.lane.b32.xlu1 %v1867_v29, %s1758_s6 }
  0x4a   :  { %322 = vrot.lane.b32.xlu0 %v76_v30, %s1758_s6  ;;  %v2016_v30 = vmul.f32 2.0, %v2007_v23 }
  0x4d   :  { %1013 = vrot.lane.b32.xlu1 %v1871_v31, %s1758_s6 }
  0x4e   :  { %1011 = vrot.lane.b32.xlu0 %v767_v35, %s1758_s6  ;;  %v2021_v35 = vld [vmem:[#allocation5 + $0x58] sm:$0xff] }
  0x4f   :  { %2769 = vst [vmem:[#allocation13_spill] sm:$0xff] %v2021_v35 }
  0x51   :  { %388 = vrot.lane.b32.xlu1 %v1848_v20, %s1759_s1 }
  0x52   :  { %386 = vrot.lane.b32.xlu0 %v1850_v21, %s1759_s1 }
  0x55   :  { %1077 = vrot.lane.b32.xlu1 %v1853_v24, %s1759_s1 }
  0x56   :  { %1075 = vrot.lane.b32.xlu0 %v1858_v25, %s1759_s1 }
  0x59   :  { %328 = vrot.lane.b32.xlu1 %v1918_v44, %s1758_s6 }
  0x5a   :  { %326 = vrot.lane.b32.xlu0 %v78_v45, %s1758_s6  ;;  %v2030_v45 = vmul.f32 2.0, %v2021_v35 }
  0x5d   :  { %1017 = vrot.lane.b32.xlu1 %v1930_v50, %s1758_s6 }
  0x5e   :  { %1015 = vrot.lane.b32.xlu0 %v769_v51, %s1758_s6  ;;  %v2043_v51 = vld [vmem:[#allocation2 + $0x68] sm:$0xff] }
  0x5f   :  { %2772 = vst [vmem:[#allocation16_spill] sm:$0xff] %v2043_v51 }
  0x61   :  { %392 = vrot.lane.b32.xlu1 %v1913_v42, %s1759_s1 }
  0x62   :  { %390 = vrot.lane.b32.xlu0 %v1915_v43, %s1759_s1 }
  0x65   :  { %1081 = vrot.lane.b32.xlu1 %v1924_v46, %s1759_s1 }
  0x66   :  { %1079 = vrot.lane.b32.xlu0 %v1926_v47, %s1759_s1 }
  0x69   :  { %332 = vrot.lane.b32.xlu1 %v1960_v58, %s1758_s6 }
  0x6a   :  { %330 = vrot.lane.b32.xlu0 %v80_v59, %s1758_s6  ;;  %v2052_v59 = vmul.f32 2.0, %v2043_v51 }
  0x6c   :  { %2774 = vst [vmem:[#allocation18_spill] sm:$0xff] %v2052_v59 }
  0x6d   :  { %1021 = vrot.lane.b32.xlu1 %v1972_v3, %s1758_s6 }
  0x6e   :  { %1019 = vrot.lane.b32.xlu0 %v771_v4, %s1758_s6  ;;  %v2057_v4 = vld [vmem:[#allocation5 + $0x68] sm:$0xff] }
  0x6f   :  { %2776 = vst [vmem:[#allocation20_spill] sm:$0xff] %v2057_v4  ;;  %v2066_v11 = vmul.f32 2.0, %v2057_v4 }
  0x71   :  { %396 = vrot.lane.b32.xlu1 %v1955_v56, %s1759_s1  ;;  %2778 = vst [vmem:[#allocation22_spill] sm:$0xff] %v2066_v11 }
  0x72   :  { %394 = vrot.lane.b32.xlu0 %v1957_v57, %s1759_s1 }
  0x75   :  { %1085 = vrot.lane.b32.xlu1 %v1966_v60, %s1759_s1 }
  0x76   :  { %1083 = vrot.lane.b32.xlu0 %v1968_v61, %s1759_s1 }
  0x79   :  { %336 = vrot.lane.b32.xlu1 %v2016_v30, %s1758_s6 }
  0x7a   :  { %334 = vrot.lane.b32.xlu0 %v2019_v34, %s1758_s6 }
  0x7d   :  { %1025 = vrot.lane.b32.xlu1 %v2030_v45, %s1758_s6 }
  0x7e   :  { %1023 = vrot.lane.b32.xlu0 %v2033_v49, %s1758_s6 }
  0x81   :  { %400 = vrot.lane.b32.xlu1 %v2007_v23, %s1759_s1 }
  0x82   :  { %398 = vrot.lane.b32.xlu0 %v2009_v28, %s1759_s1 }
  0x85   :  { %1089 = vrot.lane.b32.xlu1 %v2021_v35, %s1759_s1 }
  0x86   :  { %1087 = vrot.lane.b32.xlu0 %v2023_v38, %s1759_s1 }
  0x89   :  { %340 = vrot.lane.b32.xlu1 %v2052_v59, %s1758_s6  ;;  %v867_v59 = vrot.slane %v1801_v0, 2 }
  0x8a   :  { %338 = vrot.lane.b32.xlu0 %v2055_v63, %s1758_s6  ;;  %v145_v63 = vadd.f32 %v1863_v26, %v1803_v1  ;;  %v2791_v26 = vrot.slane %v1814_v6, 1 }
  0x8d   :  { %1029 = vrot.lane.b32.xlu1 %v2066_v11, %s1758_s6 }
  0x8e   :  { %1027 = vrot.lane.b32.xlu0 %v2069_v62, %s1758_s6  ;;  %v2788_v62 = vrot.slane %v1817_v7, 1 }
  0x90   :  { %v146_v11 = vadd.f32 %v2788_v62, %v1809_v5  ;;  %v836_v62 = vadd.f32 %v2791_v26, %v1805_v2  ;;  %v182_v26 = vrot.slane %v1819_v8, 2 }
  0x91   :  { %404 = vrot.lane.b32.xlu1 %v2043_v51, %s1759_s1  ;;  %v179_v51 = vrot.slane %v1809_v5, 2 }
  0x92   :  { %402 = vrot.lane.b32.xlu0 %v2045_v53, %s1759_s1 }
  0x93   :  { %v2125_v23 = vadd.f32 %v179_v51, %v146_v11  ;;  %v870_v11 = vrot.slane %v1836_v13, 2 }
  0x95   :  { %1093 = vrot.lane.b32.xlu1 %v2057_v4, %s1759_s1  ;;  %2789 = vst [vmem:[#allocation32_spill] sm:$0xff] %v2125_v23 }
  0x96   :  { %1091 = vrot.lane.b32.xlu0 %v2059_v14, %s1759_s1 }
  0x99   :  { %344 = vrot.lane.b32.xlu1 %v2088_v37, %s1758_s6  ;;  %v178_v37 = vrot.slane %v1803_v1, 2 }
  0x9a   :  { %342 = vrot.lane.b32.xlu0 %v2091_v33, %s1758_s6 }
  0x9b   :  { %v1004_v4 = vpop.permute.xlu1 %1003 }
  0x9c   :  { %v315_v14 = vpop.permute.xlu0 %314 }
  0x9d   :  { %1033 = vrot.lane.b32.xlu1 %v2102_v19, %s1758_s6  ;;  %v868_v19 = vrot.slane %v1805_v2, 2 }
  0x9e   :  { %1031 = vrot.lane.b32.xlu0 %v2105_v15, %s1758_s6  ;;  %v180_v15 = vsel %vm177_vm1, %v178_v37, %v179_v51  ;;  %v835_v37 = vadd.f32 %v1876_v32, %v1801_v0  ;;  %v362_v51 = vadd.f32 %v315_v14, %v1803_v1  ;;  %v147_v32 = vadd.f32 %v1893_v39, %v1821_v9 }
  0x9f   :  { %v1006_v33 = vpop.permute.xlu1 %1005  ;;  %v2127_v7 = vadd.f32 %v180_v15, %v145_v63  ;;  %v871_v15 = vrot.slane %v1834_v12, 2  ;;  %v181_v63 = vrot.slane %v1821_v9, 2  ;;  %v2145_v49 = vadd.f32 %v868_v19, %v836_v62 }
  0xa0   :  { %v317_v53 = vpop.permute.xlu0 %316 }
  0xa1   :  { %408 = vrot.lane.b32.xlu1 %v2079_v52, %s1759_s1  ;;  %2790 = vst [vmem:[#allocation33_spill] sm:$0xff] %v2127_v7  ;;  %v869_v52 = vsel %vm177_vm1, %v867_v59, %v868_v19  ;;  %v363_v6 = vadd.f32 %v317_v53, %v1809_v5  ;;  %v837_v5 = vadd.f32 %v1883_v36, %v1836_v13 }
  0xa2   :  { %406 = vrot.lane.b32.xlu0 %v2081_v48, %s1759_s1  ;;  %v2151_v1 = vadd.f32 %v869_v52, %v835_v37  ;;  %v872_v19 = vsel %vm177_vm1, %v870_v11, %v871_v15  ;;  %v183_v53 = vsel %vm177_vm1, %v181_v63, %v182_v26  ;;  %v2792_v52 = vrot.slane %v1828_v10, 1 }
  0xa3   :  { %v321_v35 = vpop.permute.xlu1 %320  ;;  %v2167_v36 = vadd.f32 %v872_v19, %v837_v5  ;;  %v2169_v39 = vadd.f32 %v183_v53, %v147_v32 }
  0xa4   :  { %v319_v38 = vpop.permute.xlu0 %318  ;;  %v148_v37 = vadd.f32 %v2792_v52, %v1819_v8 }
  0xa5   :  { %1097 = vrot.lane.b32.xlu1 %v2093_v22, %s1759_s1 }
  0xa6   :  { %1095 = vrot.lane.b32.xlu0 %v2095_v27, %s1759_s1  ;;  %v2177_v32 = vadd.f32 %v182_v26, %v148_v37 }
  0xa7   :  { %v381_v22 = vpop.permute.xlu1 %380 }
  0xa8   :  { %v379_v48 = vpop.permute.xlu0 %378  ;;  %v427_v27 = vadd.f32 %v381_v22, %v363_v6  ;;  %v1051_v6 = vadd.f32 %v1004_v4, %v1801_v0  ;;  %v2793_v0 = vrot.slane %v1844_v16, 1 }
  0xa9   :  { %v426_v28 = vadd.f32 %v379_v48, %v362_v51  ;;  %252 = vrot.lane.b32.xlu1 %v2125_v23, %s1760_s7 }
  0xaa   :  { %250 = vrot.lane.b32.xlu0 %v2127_v7, %s1760_s7  ;;  %v460_v22 = vrot.slane %v427_v27, 6 }
  0xab   :  { %v459_v48 = vrot.slane %v426_v28, 6  ;;  %v1010_v59 = vpop.permute.xlu1 %1009 }
  0xac   :  { %v1008_v14 = vpop.permute.xlu0 %1007  ;;  %v1054_v16 = vadd.f32 %v1010_v59, %v1834_v12  ;;  %v873_v59 = vrot.slane %v1858_v25, 2 }
  0xad   :  { %v499_v62 = vsub.f32 %v426_v28, %v459_v48  ;;  %v461_v51 = vsel %vm458_vm2, %v459_v48, %v460_v22  ;;  %941 = vrot.lane.b32.xlu1 %v2145_v49, %s1760_s7  ;;  %v1052_v28 = vadd.f32 %v1006_v33, %v1805_v2  ;;  %v838_v2 = vadd.f32 %v2793_v0, %v1834_v12 }
  0xae   :  { %939 = vrot.lane.b32.xlu0 %v2151_v1, %s1760_s7  ;;  %v500_v11 = vsub.f32 %v427_v27, %v461_v51  ;;  %v365_v27 = vadd.f32 %v321_v35, %v1819_v8  ;;  %v364_v33 = vadd.f32 %v319_v38, %v1821_v9  ;;  %v185_v35 = vrot.slane %v1848_v20, 2 }
  0xaf   :  { %v531_v63 = vmul.f32 %v499_v62, %v499_v62  ;;  %v1070_v22 = vpop.permute.xlu1 %1069  ;;  %v2191_v8 = vadd.f32 %v871_v15, %v838_v2  ;;  %v1053_v38 = vadd.f32 %v1008_v14, %v1836_v13  ;;  %v149_v12 = vadd.f32 %v1898_v40, %v1850_v21 }
  0xb0   :  { %v1068_v48 = vpop.permute.xlu0 %1067  ;;  %v532_v10 = vmul.f32 %v500_v11, %v500_v11  ;;  %v1116_v23 = vadd.f32 %v1070_v22, %v1052_v28  ;;  %v184_v11 = vrot.slane %v1850_v21, 2 }
  0xb1   :  { %v563_v52 = vrot.slane %v531_v63, 2  ;;  %v1115_v7 = vadd.f32 %v1068_v48, %v1051_v6  ;;  %943 = vrot.lane.b32.xlu1 %v2167_v36, %s1760_s7 }
  0xb2   :  { %254 = vrot.lane.b32.xlu0 %v2169_v39, %s1760_s7  ;;  %v564_v5 = vrot.slane %v532_v10, 2  ;;  %v1148_v4 = vrot.slane %v1116_v23, 6  ;;  %v186_v14 = vsel %vm177_vm1, %v184_v11, %v185_v35 }
  0xb3   :  { %v1147_v19 = vrot.slane %v1115_v7, 6  ;;  %v385_v53 = vpop.permute.xlu1 %384 }
  0xb4   :  { %v383_v62 = vpop.permute.xlu0 %382  ;;  %v565_v51 = vsel %vm177_vm1, %v563_v52, %v564_v5  ;;  %v429_v28 = vadd.f32 %v385_v53, %v365_v27 }
  0xb5   :  { %v1187_v6 = vsub.f32 %v1115_v7, %v1147_v19  ;;  %v428_v26 = vadd.f32 %v383_v62, %v364_v33  ;;  %v1149_v37 = vsel %vm458_vm2, %v1147_v19, %v1148_v4  ;;  %587 = vrot.lane.b32.xlu1 %v565_v51, %s1760_s7  ;;  %v874_v33 = vrot.slane %v1853_v24, 2 }
  0xb6   :  { %256 = vrot.lane.b32.xlu0 %v2177_v32, %s1760_s7  ;;  %v1188_v9 = vsub.f32 %v1116_v23, %v1149_v37  ;;  %v463_v7 = vrot.slane %v429_v28, 6  ;;  %v839_v37 = vadd.f32 %v1907_v41, %v1858_v25 }
  0xb7   :  { %v1219_v63 = vmul.f32 %v1187_v6, %v1187_v6  ;;  %v462_v22 = vrot.slane %v428_v26, 6  ;;  %v1074_v48 = vpop.permute.xlu1 %1073 }
  0xb8   :  { %v1072_v10 = vpop.permute.xlu0 %1071  ;;  %v1220_v52 = vmul.f32 %v1188_v9, %v1188_v9  ;;  %v1118_v15 = vadd.f32 %v1074_v48, %v1054_v16  ;;  %v2209_v16 = vadd.f32 %v186_v14, %v149_v12  ;;  %v2794_v12 = vrot.slane %v1867_v29, 1 }
  0xb9   :  { %v1251_v0 = vrot.slane %v1219_v63, 2  ;;  %v501_v27 = vsub.f32 %v428_v26, %v462_v22  ;;  %v1117_v2 = vadd.f32 %v1072_v10, %v1053_v38  ;;  %945 = vrot.lane.b32.xlu1 %v2191_v8, %s1760_s7  ;;  %v464_v23 = vsel %vm458_vm2, %v462_v22, %v463_v7 }
  0xba   :  { %589 = vrot.lane.b32.xlu0 %v564_v5, %s1760_s7  ;;  %v1252_v13 = vrot.slane %v1220_v52, 2  ;;  %v1151_v40 = vrot.slane %v1118_v15, 6  ;;  %v502_v53 = vsub.f32 %v429_v28, %v464_v23  ;;  %v875_v63 = vsel %vm177_vm1, %v873_v59, %v874_v33 }
  0xbb   :  { %v533_v4 = vmul.f32 %v501_v27, %v501_v27  ;;  %v1150_v19 = vrot.slane %v1117_v2, 6  ;;  %v325_v62 = vpop.permute.xlu1 %324  ;;  %v150_v27 = vadd.f32 %v2794_v12, %v1848_v20  ;;  %v2795_v14 = vrot.slane %v1871_v31, 1 }
  0xbc   :  { %v323_v51 = vpop.permute.xlu0 %322  ;;  %v1253_v6 = vsel %vm177_vm1, %v1251_v0, %v1252_v13  ;;  %v534_v11 = vmul.f32 %v502_v53, %v502_v53  ;;  %v2216_v0 = vadd.f32 %v875_v63, %v839_v37  ;;  %v876_v63 = vrot.slane %v1926_v47, 2 }
  0xbd   :  { %v1189_v26 = vsub.f32 %v1117_v2, %v1150_v19  ;;  %v566_v5 = vrot.slane %v533_v4, 2  ;;  %1277 = vrot.lane.b32.xlu1 %v1252_v13, %s1760_s7  ;;  %v1152_v9 = vsel %vm458_vm2, %v1150_v19, %v1151_v40  ;;  %v366_v59 = vadd.f32 %v323_v51, %v1850_v21 }
  0xbe   :  { %1275 = vrot.lane.b32.xlu0 %v1253_v6, %s1760_s7  ;;  %v1190_v28 = vsub.f32 %v1118_v15, %v1152_v9  ;;  %v567_v48 = vrot.slane %v534_v11, 2  ;;  %v367_v15 = vadd.f32 %v325_v62, %v1848_v20  ;;  %v840_v4 = vadd.f32 %v2795_v14, %v1853_v24 }
  0xbf   :  { %v1221_v38 = vmul.f32 %v1189_v26, %v1189_v26  ;;  %v1014_v7 = vpop.permute.xlu1 %1013  ;;  %v2230_v29 = vadd.f32 %v185_v35, %v150_v27  ;;  %v187_v20 = vrot.slane %v1915_v43, 2  ;;  %v188_v21 = vrot.slane %v1913_v42, 2 }
  0xc0   :  { %v1012_v22 = vpop.permute.xlu0 %1011  ;;  %v1222_v52 = vmul.f32 %v1190_v28, %v1190_v28  ;;  %v568_v41 = vsel %vm177_vm1, %v566_v5, %v567_v48  ;;  %v1056_v62 = vadd.f32 %v1014_v7, %v1853_v24  ;;  %v2237_v5 = vadd.f32 %v874_v33, %v840_v4 }
  0xc1   :  { %v1254_v10 = vrot.slane %v1221_v38, 2  ;;  %591 = vrot.lane.b32.xlu1 %v568_v41, %s1760_s7  ;;  %v1055_v51 = vadd.f32 %v1012_v22, %v1858_v25  ;;  %v151_v24 = vadd.f32 %v1940_v54, %v1915_v43  ;;  %v189_v25 = vsel %vm177_vm1, %v187_v20, %v188_v21 }
  0xc2   :  { %258 = vrot.lane.b32.xlu0 %v2209_v16, %s1760_s7  ;;  %v1255_v2 = vrot.slane %v1222_v52, 2 }
  0xc3   :  { %v389_v13 = vpop.permute.xlu1 %388 }
  0xc4   :  { %v387_v23 = vpop.permute.xlu0 %386  ;;  %v431_v40 = vadd.f32 %v389_v13, %v367_v15  ;;  %v1256_v53 = vsel %vm177_vm1, %v1254_v10, %v1255_v2  ;;  %v877_v10 = vrot.slane %v1924_v46, 2 }
  0xc5   :  { %v430_v19 = vadd.f32 %v387_v23, %v366_v59  ;;  %1279 = vrot.lane.b32.xlu1 %v1256_v53, %s1760_s7  ;;  %v2250_v59 = vadd.f32 %v189_v25, %v151_v24  ;;  %v841_v23 = vadd.f32 %v1949_v55, %v1926_v47  ;;  %v2796_v55 = vrot.slane %v1918_v44, 1 }
  0xc6   :  { %947 = vrot.lane.b32.xlu0 %v2216_v0, %s1760_s7  ;;  %v466_v6 = vrot.slane %v431_v40, 6  ;;  %v878_v4 = vsel %vm177_vm1, %v876_v63, %v877_v10 }
  0xc7   :  { %v465_v31 = vrot.slane %v430_v19, 6  ;;  %v1078_v26 = vpop.permute.xlu1 %1077 }
  0xc8   :  { %v1076_v37 = vpop.permute.xlu0 %1075  ;;  %v1120_v9 = vadd.f32 %v1078_v26, %v1056_v62 }
  0xc9   :  { %v503_v11 = vsub.f32 %v430_v19, %v465_v31  ;;  %v1119_v35 = vadd.f32 %v1076_v37, %v1055_v51  ;;  %v467_v38 = vsel %vm458_vm2, %v465_v31, %v466_v6  ;;  %593 = vrot.lane.b32.xlu1 %v567_v48, %s1760_s7  ;;  %v2260_v51 = vadd.f32 %v878_v4, %v841_v23 }
  0xca   :  { %260 = vrot.lane.b32.xlu0 %v2230_v29, %s1760_s7  ;;  %v504_v28 = vsub.f32 %v431_v40, %v467_v38  ;;  %v1154_v22 = vrot.slane %v1120_v9, 6  ;;  %v152_v6 = vadd.f32 %v2796_v55, %v1913_v42 }
  0xcb   :  { %v535_v7 = vmul.f32 %v503_v11, %v503_v11  ;;  %v1153_v33 = vrot.slane %v1119_v35, 6  ;;  %v329_v52 = vpop.permute.xlu1 %328 }
  0xcc   :  { %v327_v41 = vpop.permute.xlu0 %326  ;;  %v536_v12 = vmul.f32 %v504_v28, %v504_v28  ;;  %v2274_v44 = vadd.f32 %v188_v21, %v152_v6  ;;  %v843_v6 = vadd.f32 %v1991_v18, %v1968_v61 }
  0xcd   :  { %v569_v27 = vrot.slane %v535_v7, 2  ;;  %v1191_v15 = vsub.f32 %v1119_v35, %v1153_v33  ;;  %v1155_v13 = vsel %vm458_vm2, %v1153_v33, %v1154_v22  ;;  %1281 = vrot.lane.b32.xlu1 %v1255_v2, %s1760_s7  ;;  %v369_v2 = vadd.f32 %v329_v52, %v1913_v42 }
  0xce   :  { %949 = vrot.lane.b32.xlu0 %v2237_v5, %s1760_s7  ;;  %v570_v54 = vrot.slane %v536_v12, 2  ;;  %v1192_v48 = vsub.f32 %v1120_v9, %v1155_v13  ;;  %v368_v31 = vadd.f32 %v327_v41, %v1915_v43  ;;  %v2797_v9 = vrot.slane %v1930_v50, 1 }
  0xcf   :  { %v1223_v14 = vmul.f32 %v1191_v15, %v1191_v15  ;;  %v1018_v40 = vpop.permute.xlu1 %1017  ;;  %v190_v42 = vrot.slane %v1957_v57, 2  ;;  %v191_v43 = vrot.slane %v1955_v56, 2  ;;  %v879_v13 = vrot.slane %v1968_v61, 2 }
  0xd0   :  { %v1016_v19 = vpop.permute.xlu0 %1015  ;;  %v571_v53 = vsel %vm177_vm1, %v569_v27, %v570_v54  ;;  %v1224_v62 = vmul.f32 %v1192_v48, %v1192_v48  ;;  %v842_v35 = vadd.f32 %v2797_v9, %v1924_v46  ;;  %v1058_v25 = vadd.f32 %v1018_v40, %v1924_v46 }
  0xd1   :  { %v1257_v20 = vrot.slane %v1223_v14, 2  ;;  %595 = vrot.lane.b32.xlu1 %v571_v53, %s1760_s7  ;;  %v1057_v63 = vadd.f32 %v1016_v19, %v1926_v47  ;;  %v153_v46 = vadd.f32 %v1982_v17, %v1957_v57  ;;  %v192_v47 = vsel %vm177_vm1, %v190_v42, %v191_v43 }
  0xd2   :  { %262 = vrot.lane.b32.xlu0 %v2250_v59, %s1760_s7  ;;  %v1258_v26 = vrot.slane %v1224_v62, 2  ;;  %v2281_v52 = vadd.f32 %v877_v10, %v842_v35  ;;  %v880_v48 = vrot.slane %v1966_v60, 2  ;;  %v121_v35 = vrot.slane %v2016_v30, 1 }
  0xd3   :  { %v393_v37 = vpop.permute.xlu1 %392  ;;  %v2294_v62 = vadd.f32 %v192_v47, %v153_v46  ;;  %v2802_v47 = vld [vmem:[#allocation11_spill] sm:$0xff] }
  0xd4   :  { %v391_v11 = vpop.permute.xlu0 %390  ;;  %v433_v38 = vadd.f32 %v393_v37, %v369_v2  ;;  %v1259_v24 = vsel %vm177_vm1, %v1257_v20, %v1258_v26 }
  0xd5   :  { %v432_v28 = vadd.f32 %v391_v11, %v368_v31  ;;  %1283 = vrot.lane.b32.xlu1 %v1259_v24, %s1760_s7  ;;  %v881_v31 = vsel %vm177_vm1, %v879_v13, %v880_v48  ;;  %v194_v13 = vrot.slane %v2802_v47, 2 }
  0xd6   :  { %951 = vrot.lane.b32.xlu0 %v2260_v51, %s1760_s7  ;;  %v469_v7 = vrot.slane %v433_v38, 6  ;;  %v2306_v18 = vadd.f32 %v881_v31, %v843_v6  ;;  %v2803_v31 = vld [vmem:[#allocation14_spill] sm:$0xff] }
  0xd7   :  { %v468_v50 = vrot.slane %v432_v28, 6  ;;  %v1082_v22 = vpop.permute.xlu1 %1081 }
  0xd8   :  { %v1080_v33 = vpop.permute.xlu0 %1079  ;;  %v1122_v12 = vadd.f32 %v1082_v22, %v1058_v25  ;;  %v811_v22 = vrot.slane %v2030_v45, 1  ;;  %v2809_v45 = vld [vmem:[#allocation17_spill] sm:$0xff] }
  0xd9   :  { %v505_v41 = vsub.f32 %v432_v28, %v468_v50  ;;  %v1121_v21 = vadd.f32 %v1080_v33, %v1057_v63  ;;  %v470_v27 = vsel %vm458_vm2, %v468_v50, %v469_v7  ;;  %597 = vrot.lane.b32.xlu1 %v570_v54, %s1760_s7 }
  0xda   :  { %264 = vrot.lane.b32.xlu0 %v2274_v44, %s1760_s7  ;;  %v506_v15 = vsub.f32 %v433_v38, %v470_v27  ;;  %v1157_v14 = vrot.slane %v1122_v12, 6  ;;  %v120_v38 = vrot.slane %v2019_v34, 1  ;;  %v2799_v34 = vrot.slane %v1972_v3, 1  ;;  %v2801_v3 = vld [vmem:[#allocation12_spill] sm:$0xff] }
  0xdb   :  { %v537_v23 = vmul.f32 %v505_v41, %v505_v41  ;;  %v1156_v10 = vrot.slane %v1121_v21, 6  ;;  %v333_v4 = vpop.permute.xlu1 %332  ;;  %v193_v46 = vrot.slane %v2801_v3, 2 }
  0xdc   :  { %v331_v40 = vpop.permute.xlu0 %330  ;;  %v538_v19 = vmul.f32 %v506_v15, %v506_v15  ;;  %v371_v25 = vadd.f32 %v333_v4, %v1955_v56  ;;  %v844_v50 = vadd.f32 %v2799_v34, %v1966_v60 }
  0xdd   :  { %v572_v53 = vrot.slane %v537_v23, 2  ;;  %v1193_v20 = vsub.f32 %v1121_v21, %v1156_v10  ;;  %v1158_v55 = vsel %vm458_vm2, %v1156_v10, %v1157_v14  ;;  %1285 = vrot.lane.b32.xlu1 %v1258_v26, %s1760_s7  ;;  %v2798_v26 = vrot.slane %v1960_v58, 1 }
  0xde   :  { %953 = vrot.lane.b32.xlu0 %v2281_v52, %s1760_s7  ;;  %v573_v17 = vrot.slane %v538_v19, 2  ;;  %v1194_v54 = vsub.f32 %v1122_v12, %v1158_v55  ;;  %v370_v63 = vadd.f32 %v331_v40, %v1957_v57  ;;  %v2800_v57 = vld [vmem:[#allocation15_spill] sm:$0xff] }
  0xdf   :  { %v1225_v2 = vmul.f32 %v1193_v20, %v1193_v20  ;;  %v1022_v37 = vpop.permute.xlu1 %1021  ;;  %v154_v42 = vadd.f32 %v2798_v26, %v1955_v56  ;;  %v122_v56 = vsel %vm104_vm0, %v120_v38, %v121_v35  ;;  %v810_v27 = vrot.slane %v2800_v57, 1  ;;  %v2804_v38 = vld [vmem:[#allocation13_spill] sm:$0xff] }
  0xe0   :  { %v1020_v11 = vpop.permute.xlu0 %1019  ;;  %v574_v9 = vsel %vm177_vm1, %v572_v53, %v573_v17  ;;  %v1226_v24 = vmul.f32 %v1194_v54, %v1194_v54  ;;  %v1060_v23 = vadd.f32 %v1022_v37, %v1966_v60  ;;  %v2332_v53 = vadd.f32 %v880_v48, %v844_v50 }
  0xe1   :  { %v1260_v28 = vrot.slane %v1225_v2, 2  ;;  %599 = vrot.lane.b32.xlu1 %v574_v9, %s1760_s7  ;;  %v2325_v15 = vadd.f32 %v191_v43, %v154_v42  ;;  %v1059_v14 = vadd.f32 %v1020_v11, %v1968_v61  ;;  %v155_v20 = vadd.f32 %v122_v56, %v2801_v3 }
  0xe2   :  { %266 = vrot.lane.b32.xlu0 %v2294_v62, %s1760_s7  ;;  %v1261_v7 = vrot.slane %v1226_v24, 2  ;;  %v195_v61 = vsel %vm177_vm1, %v193_v46, %v194_v13  ;;  %v812_v54 = vsel %vm104_vm0, %v810_v27, %v811_v22  ;;  %v882_v48 = vrot.slane %v2803_v31, 2  ;;  %v2805_v46 = vld [vmem:[#allocation18_spill] sm:$0xff] }
  0xe3   :  { %v397_v33 = vpop.permute.xlu1 %396 }
  0xe4   :  { %v395_v41 = vpop.permute.xlu0 %394  ;;  %v435_v12 = vadd.f32 %v397_v33, %v371_v25  ;;  %v1262_v58 = vsel %vm177_vm1, %v1260_v28, %v1261_v7  ;;  %v883_v28 = vrot.slane %v2804_v38, 2  ;;  %v2348_v33 = vadd.f32 %v195_v61, %v155_v20 }
  0xe5   :  { %v434_v21 = vadd.f32 %v395_v41, %v370_v63  ;;  %1287 = vrot.lane.b32.xlu1 %v1262_v58, %s1760_s7 }
  0xe6   :  { %955 = vrot.lane.b32.xlu0 %v2306_v18, %s1760_s7  ;;  %v472_v10 = vrot.slane %v435_v12, 6 }
  0xe7   :  { %v471_v4 = vrot.slane %v434_v21, 6  ;;  %v1086_v40 = vpop.permute.xlu1 %1085 }
  0xe8   :  { %v1084_v19 = vpop.permute.xlu0 %1083  ;;  %v1124_v6 = vadd.f32 %v1086_v40, %v1060_v23  ;;  %v124_v23 = vrot.slane %v2805_v46, 1  ;;  %v156_v40 = vadd.f32 %v121_v35, %v2802_v47  ;;  %v2807_v35 = vld [vmem:[#allocation22_spill] sm:$0xff] }
  0xe9   :  { %v473_v43 = vsel %vm458_vm2, %v471_v4, %v472_v10  ;;  %v507_v55 = vsub.f32 %v434_v21, %v471_v4  ;;  %v1123_v2 = vadd.f32 %v1084_v19, %v1059_v14  ;;  %601 = vrot.lane.b32.xlu1 %v573_v17, %s1760_s7  ;;  %v884_v17 = vsel %vm177_vm1, %v882_v48, %v883_v28  ;;  %v2806_v14 = vld [vmem:[#allocation19_spill] sm:$0xff]  ;;  %v2815_v46 = vld [vmem:[#allocation30_spill] sm:$0xff] }
  0xea   :  { %268 = vrot.lane.b32.xlu0 %v2325_v15, %s1760_s7  ;;  %v508_v60 = vsub.f32 %v435_v12, %v473_v43  ;;  %v1160_v11 = vrot.slane %v1124_v6, 6  ;;  %v845_v12 = vadd.f32 %v812_v54, %v2803_v31  ;;  %v123_v10 = vrot.slane %v2806_v14, 1  ;;  %v2808_v48 = vld [vmem:[#allocation23_spill] sm:$0xff] }
  0xeb   :  { %v539_v37 = vmul.f32 %v507_v55, %v507_v55  ;;  %v1159_v9 = vrot.slane %v1123_v2, 6  ;;  %v337_v24 = vpop.permute.xlu1 %336  ;;  %v846_v55 = vadd.f32 %v811_v22, %v2804_v38  ;;  %v196_v22 = vrot.slane %v2809_v45, 2 }
  0xec   :  { %v335_v26 = vpop.permute.xlu0 %334  ;;  %v540_v42 = vmul.f32 %v508_v60, %v508_v60  ;;  %v2361_v19 = vadd.f32 %v884_v17, %v845_v12  ;;  %v373_v20 = vadd.f32 %v337_v24, %v2802_v47  ;;  %v814_v60 = vrot.slane %v2807_v35, 1 }
  0xed   :  { %v575_v25 = vrot.slane %v539_v37, 2  ;;  %v1161_v63 = vsel %vm458_vm2, %v1159_v9, %v1160_v11  ;;  %v1195_v34 = vsub.f32 %v1123_v2, %v1159_v9  ;;  %1289 = vrot.lane.b32.xlu1 %v1261_v7, %s1760_s7  ;;  %v372_v43 = vadd.f32 %v335_v26, %v2801_v3  ;;  %v2810_v11 = vld [vmem:[#allocation16_spill] sm:$0xff] }
  0xee   :  { %957 = vrot.lane.b32.xlu0 %v2332_v53, %s1760_s7  ;;  %v576_v50 = vrot.slane %v540_v42, 2  ;;  %v1196_v41 = vsub.f32 %v1124_v6, %v1161_v63  ;;  %v125_v47 = vsel %vm104_vm0, %v123_v10, %v124_v23  ;;  %v813_v3 = vrot.slane %v2808_v48, 1 }
  0xef   :  { %v1227_v21 = vmul.f32 %v1195_v34, %v1195_v34  ;;  %v1026_v58 = vpop.permute.xlu1 %1025  ;;  %v2377_v37 = vadd.f32 %v194_v13, %v156_v40  ;;  %v197_v9 = vrot.slane %v2810_v11, 2  ;;  %v157_v12 = vadd.f32 %v125_v47, %v2809_v45 }
  0xf0   :  { %v1024_v56 = vpop.permute.xlu0 %1023  ;;  %v577_v57 = vsel %vm177_vm1, %v575_v25, %v576_v50  ;;  %v1228_v27 = vmul.f32 %v1196_v41, %v1196_v41  ;;  %v1062_v24 = vadd.f32 %v1026_v58, %v2804_v38  ;;  %v2384_v41 = vadd.f32 %v883_v28, %v846_v55 }
  0xf1   :  { %v1263_v4 = vrot.slane %v1227_v21, 2  ;;  %603 = vrot.lane.b32.xlu1 %v577_v57, %s1760_s7  ;;  %v1061_v26 = vadd.f32 %v1024_v56, %v2803_v31  ;;  %v198_v31 = vsel %vm177_vm1, %v196_v22, %v197_v9  ;;  %v815_v58 = vsel %vm104_vm0, %v813_v3, %v814_v60  ;;  %v2811_v56 = vld [vmem:[#allocation21_spill] sm:$0xff] }
  0xf2   :  { %270 = vrot.lane.b32.xlu0 %v2348_v33, %s1760_s7  ;;  %v1264_v7 = vrot.slane %v1228_v27, 2  ;;  %v885_v27 = vrot.slane %v2811_v56, 2  ;;  %v847_v47 = vadd.f32 %v815_v58, %v2811_v56 }
  0xf3   :  { %v401_v6 = vpop.permute.xlu1 %400 }
  0xf4   :  { %v399_v2 = vpop.permute.xlu0 %398  ;;  %v1265_v30 = vsel %vm177_vm1, %v1263_v4, %v1264_v7  ;;  %v437_v61 = vadd.f32 %v401_v6, %v373_v20  ;;  %v2812_v4 = vld [vmem:[#allocation20_spill] sm:$0xff] }
  0xf5   :  { %v436_v54 = vadd.f32 %v399_v2, %v372_v43  ;;  %1291 = vrot.lane.b32.xlu1 %v1265_v30, %s1760_s7  ;;  %v886_v40 = vrot.slane %v2812_v4, 2 }
  0xf6   :  { %959 = vrot.lane.b32.xlu0 %v2361_v19, %s1760_s7  ;;  %v475_v42 = vrot.slane %v437_v61, 6 }
  0xf7   :  { %v474_v25 = vrot.slane %v436_v54, 6  ;;  %v1090_v63 = vpop.permute.xlu1 %1089 }
  0xf8   :  { %v1088_v34 = vpop.permute.xlu0 %1087  ;;  %v1126_v17 = vadd.f32 %v1090_v63, %v1062_v24  ;;  %v2814_v63 = vld [vmem:[#allocation27_spill] sm:$0xff] }
  0xf9   :  { %v476_v13 = vsel %vm458_vm2, %v474_v25, %v475_v42  ;;  %v509_v21 = vsub.f32 %v436_v54, %v474_v25  ;;  %v1125_v57 = vadd.f32 %v1088_v34, %v1061_v26  ;;  %605 = vrot.lane.b32.xlu1 %v576_v50, %s1760_s7  ;;  %v887_v50 = vsel %vm177_vm1, %v885_v27, %v886_v40  ;;  %v2813_v42 = vld [vmem:[#allocation26_spill] sm:$0xff] }
  0xfa   :  { %272 = vrot.lane.b32.xlu0 %v2377_v37, %s1760_s7  ;;  %v510_v38 = vsub.f32 %v437_v61, %v476_v13  ;;  %v1163_v28 = vrot.slane %v1126_v17, 6  ;;  %v2398_v61 = vadd.f32 %v198_v31, %v157_v12  ;;  %v127_v25 = vrot.slane %v2813_v42, 1 }
  0xfb   :  { %v541_v14 = vmul.f32 %v509_v21, %v509_v21  ;;  %v1162_v10 = vrot.slane %v1125_v57, 6  ;;  %v341_v20 = vpop.permute.xlu1 %340  ;;  %v126_v34 = vrot.slane %v2814_v63, 1  ;;  %v158_v12 = vadd.f32 %v124_v23, %v2810_v11 }
  0xfc   :  { %v339_v43 = vpop.permute.xlu0 %338  ;;  %v542_v55 = vmul.f32 %v510_v38, %v510_v38  ;;  %v2411_v21 = vadd.f32 %v887_v50, %v847_v47  ;;  %v848_v38 = vadd.f32 %v814_v60, %v2812_v4  ;;  %v817_v23 = vrot.slane %v2815_v46, 1  ;;  %v2817_v60 = vld [vmem:[#allocation25_spill] sm:$0xff] }
  0xfd   :  { %v578_v6 = vrot.slane %v541_v14, 2  ;;  %v1164_v2 = vsel %vm458_vm2, %v1162_v10, %v1163_v28  ;;  %v1197_v30 = vsub.f32 %v1125_v57, %v1162_v10  ;;  %1293 = vrot.lane.b32.xlu1 %v1264_v7, %s1760_s7  ;;  %v374_v57 = vadd.f32 %v339_v43, %v2809_v45  ;;  %v2818_v43 = vld [vmem:[#allocation24_spill] sm:$0xff] }
  0xfe   :  { %961 = vrot.lane.b32.xlu0 %v2384_v41, %s1760_s7  ;;  %v579_v35 = vrot.slane %v542_v55, 2  ;;  %v1198_v54 = vsub.f32 %v1126_v17, %v1164_v2  ;;  %v375_v17 = vadd.f32 %v341_v20, %v2810_v11  ;;  %v128_v10 = vsel %vm104_vm0, %v126_v34, %v127_v25  ;;  %v2816_v55 = vld [vmem:[#allocation31_spill] sm:$0xff] }
  0xff   :  { %v1229_v48 = vmul.f32 %v1197_v30, %v1197_v30  ;;  %v1030_v3 = vpop.permute.xlu1 %1029  ;;  %v816_v11 = vrot.slane %v2816_v55, 1  ;;  %v2425_v45 = vadd.f32 %v197_v9, %v158_v12  ;;  %v199_v20 = vrot.slane %v2817_v60, 2 }
 0x100   :  { %v1028_v22 = vpop.permute.xlu0 %1027  ;;  %v580_v24 = vsel %vm177_vm1, %v578_v6, %v579_v35  ;;  %v1230_v26 = vmul.f32 %v1198_v54, %v1198_v54  ;;  %v200_v6 = vrot.slane %v2818_v43, 2  ;;  %v1064_v2 = vadd.f32 %v1030_v3, %v2812_v4  ;;  %v2819_v3 = vld [vmem:[#allocation29_spill] sm:$0xff] }
 0x101   :  { %v1266_v13 = vrot.slane %v1229_v48, 2  ;;  %607 = vrot.lane.b32.xlu1 %v580_v24, %s1760_s7  ;;  %v1063_v30 = vadd.f32 %v1028_v22, %v2811_v56  ;;  %v2432_v24 = vadd.f32 %v886_v40, %v848_v38  ;;  %v818_v4 = vsel %vm104_vm0, %v816_v11, %v817_v23  ;;  %v2820_v38 = vld [vmem:[#allocation28_spill] sm:$0xff] }
 0x102   :  { %274 = vrot.lane.b32.xlu0 %v2398_v61, %s1760_s7  ;;  %v1267_v7 = vrot.slane %v1230_v26, 2  ;;  %v159_v26 = vadd.f32 %v128_v10, %v2817_v60  ;;  %v201_v56 = vsel %vm177_vm1, %v199_v20, %v200_v6  ;;  %v888_v40 = vrot.slane %v2819_v3, 2 }
 0x103   :  { %v405_v31 = vpop.permute.xlu1 %404  ;;  %v850_v42 = vadd.f32 %v817_v23, %v2820_v38 }
 0x104   :  { %v403_v58 = vpop.permute.xlu0 %402  ;;  %v1268_v27 = vsel %vm177_vm1, %v1266_v13, %v1267_v7  ;;  %v439_v14 = vadd.f32 %v405_v31, %v375_v17  ;;  %v889_v31 = vrot.slane %v2820_v38, 2 }
 0x105   :  { %v438_v28 = vadd.f32 %v403_v58, %v374_v57  ;;  %1295 = vrot.lane.b32.xlu1 %v1268_v27, %s1760_s7 }
 0x106   :  { %963 = vrot.lane.b32.xlu0 %v2411_v21, %s1760_s7  ;;  %v478_v54 = vrot.slane %v439_v14, 6 }
 0x107   :  { %v477_v47 = vrot.slane %v438_v28, 6  ;;  %v1094_v48 = vpop.permute.xlu1 %1093 }
 0x108   :  { %v1092_v50 = vpop.permute.xlu0 %1091  ;;  %v1128_v34 = vadd.f32 %v1094_v48, %v1064_v2  ;;  %v2448_v2 = vadd.f32 %v201_v56, %v159_v26 }
 0x109   :  { %v479_v9 = vsel %vm458_vm2, %v477_v47, %v478_v54  ;;  %v511_v63 = vsub.f32 %v438_v28, %v477_v47  ;;  %v1127_v13 = vadd.f32 %v1092_v50, %v1063_v30  ;;  %609 = vrot.lane.b32.xlu1 %v579_v35, %s1760_s7  ;;  %v849_v30 = vadd.f32 %v818_v4, %v2819_v3 }
 0x10a   :  { %v512_v12 = vsub.f32 %v439_v14, %v479_v9  ;;  %276 = vrot.lane.b32.xlu0 %v2425_v45, %s1760_s7  ;;  %v1166_v17 = vrot.slane %v1128_v34, 6  ;;  %v890_v35 = vsel %vm177_vm1, %v888_v40, %v889_v31 }
 0x10b   :  { %v543_v22 = vmul.f32 %v511_v63, %v511_v63  ;;  %v1165_v57 = vrot.slane %v1127_v13, 6  ;;  %v345_v58 = vpop.permute.xlu1 %344 }
 0x10c   :  { %v343_v27 = vpop.permute.xlu0 %342  ;;  %v544_v14 = vmul.f32 %v512_v12, %v512_v12 }
 0x10d   :  { %v581_v28 = vrot.slane %v543_v22, 2  ;;  %v1167_v10 = vsel %vm458_vm2, %v1165_v57, %v1166_v17  ;;  %v1199_v55 = vsub.f32 %v1127_v13, %v1165_v57  ;;  %1297 = vrot.lane.b32.xlu1 %v1267_v7, %s1760_s7  ;;  %v2459_v13 = vadd.f32 %v890_v35, %v849_v30 }
 0x10e   :  { %v1200_v20 = vsub.f32 %v1128_v34, %v1167_v10  ;;  %965 = vrot.lane.b32.xlu0 %v2432_v24, %s1760_s7  ;;  %v582_v11 = vrot.slane %v544_v14, 2  ;;  %v160_v34 = vadd.f32 %v127_v25, %v2818_v43  ;;  %v377_v7 = vadd.f32 %v345_v58, %v2818_v43 }
 0x10f   :  { %v1231_v54 = vmul.f32 %v1199_v55, %v1199_v55  ;;  %v1034_v47 = vpop.permute.xlu1 %1033  ;;  %v376_v12 = vadd.f32 %v343_v27, %v2817_v60 }
 0x110   :  { %v1032_v48 = vpop.permute.xlu0 %1031  ;;  %v583_v50 = vsel %vm177_vm1, %v581_v28, %v582_v11  ;;  %v1232_v9 = vmul.f32 %v1200_v20, %v1200_v20  ;;  %v2470_v25 = vadd.f32 %v200_v6, %v160_v34  ;;  %v1066_v43 = vadd.f32 %v1034_v47, %v2820_v38 }
 0x111   :  { %v1269_v63 = vrot.slane %v1231_v54, 2  ;;  %611 = vrot.lane.b32.xlu1 %v583_v50, %s1760_s7  ;;  %v1065_v60 = vadd.f32 %v1032_v48, %v2819_v3  ;;  %v2478_v6 = vadd.f32 %v889_v31, %v850_v42 }
 0x112   :  { %278 = vrot.lane.b32.xlu0 %v2448_v2, %s1760_s7  ;;  %v1270_v26 = vrot.slane %v1232_v9, 2 }
 0x113   :  { %v409_v56 = vpop.permute.xlu1 %408 }
 0x114   :  { %v407_v4 = vpop.permute.xlu0 %406  ;;  %v1271_v40 = vsel %vm177_vm1, %v1269_v63, %v1270_v26  ;;  %v441_v22 = vadd.f32 %v409_v56, %v377_v7 }
 0x115   :  { %v440_v17 = vadd.f32 %v407_v4, %v376_v12  ;;  %1299 = vrot.lane.b32.xlu1 %v1271_v40, %s1760_s7  ;;  %v2821_v40 = vld [vmem:[#allocation33_spill] sm:$0xff] }
 0x116   :  { %967 = vrot.lane.b32.xlu0 %v2459_v13, %s1760_s7  ;;  %v481_v57 = vrot.slane %v441_v22, 6 }
 0x117   :  { %v480_v58 = vrot.slane %v440_v17, 6  ;;  %v1098_v27 = vpop.permute.xlu1 %1097 }
 0x118   :  { %v1096_v14 = vpop.permute.xlu0 %1095  ;;  %v1130_v46 = vadd.f32 %v1098_v27, %v1066_v43 }
 0x119   :  { %v482_v28 = vsel %vm458_vm2, %v480_v58, %v481_v57  ;;  %v513_v10 = vsub.f32 %v440_v17, %v480_v58  ;;  %v1129_v23 = vadd.f32 %v1096_v14, %v1065_v60  ;;  %613 = vrot.lane.b32.xlu1 %v582_v11, %s1760_s7 }
 0x11a   :  { %v514_v55 = vsub.f32 %v441_v22, %v482_v28  ;;  %280 = vrot.lane.b32.xlu0 %v2470_v25, %s1760_s7  ;;  %v1169_v20 = vrot.slane %v1130_v46, 6 }
 0x11b   :  { %v545_v38 = vmul.f32 %v513_v10, %v513_v10  ;;  %v1168_v3 = vrot.slane %v1129_v23, 6  ;;  %v253_v30 = vpop.permute.xlu1 %252 }
 0x11c   :  { %v251_v54 = vpop.permute.xlu0 %250  ;;  %v546_v35 = vmul.f32 %v514_v55, %v514_v55 }
 0x11d   :  { %v584_v47 = vrot.slane %v545_v38, 2  ;;  %v1170_v48 = vsel %vm458_vm2, %v1168_v3, %v1169_v20  ;;  %v1201_v50 = vsub.f32 %v1129_v23, %v1168_v3  ;;  %1301 = vrot.lane.b32.xlu1 %v1270_v26, %s1760_s7  ;;  %v298_v22 = vsub.f32 %v2821_v40, %v251_v54  ;;  %v2822_v26 = vld [vmem:[#allocation32_spill] sm:$0xff] }
 0x11e   :  { %v1202_v9 = vsub.f32 %v1130_v46, %v1170_v48  ;;  %969 = vrot.lane.b32.xlu0 %v2478_v6, %s1760_s7  ;;  %v585_v63 = vrot.slane %v546_v35, 2  ;;  %v299_v60 = vsub.f32 %v2822_v26, %v253_v30 }
 0x11f   :  { %v1233_v34 = vmul.f32 %v1201_v50, %v1201_v50  ;;  %v942_v31 = vpop.permute.xlu1 %941  ;;  %v515_v57 = vmul.f32 %v298_v22, %v298_v22 }
 0x120   :  { %v940_v7 = vpop.permute.xlu0 %939  ;;  %v586_v12 = vsel %vm177_vm1, %v584_v47, %v585_v63  ;;  %v1234_v11 = vmul.f32 %v1202_v9, %v1202_v9  ;;  %v516_v28 = vmul.f32 %v299_v60, %v299_v60  ;;  %v988_v10 = vsub.f32 %v2145_v49, %v942_v31 }
 0x121   :  { %v1272_v56 = vrot.slane %v1233_v34, 2  ;;  %v987_v46 = vsub.f32 %v2151_v1, %v940_v7 }
 0x122   :  { %615 = vrot.lane.b32.xlu0 %v586_v12, %s1760_s7  ;;  %v1273_v4 = vrot.slane %v1234_v11, 2  ;;  %v1204_v20 = vmul.f32 %v988_v10, %v988_v10 }
 0x123   :  { %v944_v17 = vpop.permute.xlu1 %943  ;;  %v1203_v3 = vmul.f32 %v987_v46, %v987_v46 }
 0x124   :  { %v255_v42 = vpop.permute.xlu0 %254  ;;  %v1274_v43 = vsel %vm177_vm1, %v1272_v56, %v1273_v4  ;;  %v989_v50 = vsub.f32 %v2167_v36, %v944_v17 }
 0x125   :  { %1303 = vrot.lane.b32.xlu1 %v1274_v43, %s1760_s7  ;;  %v300_v30 = vsub.f32 %v2169_v39, %v255_v42 }
 0x126   :  { %617 = vrot.lane.b32.xlu0 %v585_v63, %s1760_s7  ;;  %v1205_v7 = vmul.f32 %v989_v50, %v989_v50 }
 0x127   :  { %v588_v58 = vpop.permute.xlu1 %587  ;;  %v517_v49 = vmul.f32 %v300_v30, %v300_v30 }
 0x128   :  { %v257_v27 = vpop.permute.xlu0 %256  ;;  %v2493_v14 = vadd.f32 %v588_v58, %v515_v57 }
 0x129   :  { %1305 = vrot.lane.b32.xlu1 %v1273_v4, %s1760_s7  ;;  %v301_v34 = vsub.f32 %v2177_v32, %v257_v27 }
 0x12a   :  { %1618 = vrsqrt.f32 %v2493_v14  ;;  %vm653_vm3 = vcmp.eq.f32.partialorder %v2493_v14, inf  ;;  %vm655_vm4 = vcmp.eq.f32.partialorder %v2493_v14, 0.0 }
 0x12b   :  { %v946_v23 = vpop.permute.xlu1 %945  ;;  %v518_v40 = vmul.f32 %v301_v34, %v301_v34 }
 0x12c   :  { %v590_v55 = vpop.permute.xlu0 %589  ;;  %v990_v12 = vsub.f32 %v2191_v8, %v946_v23  ;;  %v656_v8 = vand.u32 2147483648, %v2493_v14 }
 0x12d   :  { %v636_v38 = vadd.f32 %v590_v55, %v516_v28 }
 0x12e   :  { %v1206_v17 = vmul.f32 %v990_v12, %v990_v12 }
 0x12f   :  { %1620 = vrsqrt.f32 %v636_v38  ;;  %v1278_v54 = vpop.permute.xlu1 %1277  ;;  %vm660_vm5 = vcmp.eq.f32.partialorder %v636_v38, inf  ;;  %vm662_vm6 = vcmp.eq.f32.partialorder %v636_v38, 0.0  ;;  %v663_v26 = vand.u32 2147483648, %v636_v38 }
 0x130   :  { %v1276_v35 = vpop.permute.xlu0 %1275  ;;  %v1324_v47 = vadd.f32 %v1278_v54, %v1204_v20 }
 0x131   :  { %v1323_v48 = vadd.f32 %v1276_v35, %v1203_v3 }
 0x132   :  { %1622 = vrsqrt.f32 %v1324_v47  ;;  %vm1348_vm7 = vcmp.eq.f32.partialorder %v1324_v47, inf  ;;  %vm1350_vm8 = vcmp.eq.f32.partialorder %v1324_v47, 0.0  ;;  %v1351_v28 = vand.u32 2147483648, %v1324_v47 }
 0x133   :  { %1624 = vrsqrt.f32 %v1323_v48  ;;  %v592_v9 = vpop.permute.xlu1 %591  ;;  %vm1341_vm9 = vcmp.eq.f32.partialorder %v1323_v48, inf  ;;  %v1344_v3 = vand.u32 2147483648, %v1323_v48  ;;  %vm1343_vm10 = vcmp.eq.f32.partialorder %v1323_v48, 0.0 }
 0x134   :  { %v259_v1 = vpop.permute.xlu0 %258  ;;  %v2500_v63 = vadd.f32 %v592_v9, %v517_v49  ;;  %v1619_v31 = vpop.eup %1618 }
 0x135   :  { %v652_v22 = vmul.f32 %v1619_v31, %v2493_v14  ;;  %v302_v23 = vsub.f32 %v2209_v16, %v259_v1 }
 0x136   :  { %1626 = vrsqrt.f32 %v2500_v63  ;;  %vm667_vm11 = vcmp.eq.f32.partialorder %v2500_v63, inf  ;;  %vm669_vm13 = vcmp.eq.f32.partialorder %v2500_v63, 0.0 }
 0x137   :  { %v1280_v56 = vpop.permute.xlu1 %1279  ;;  %v654_v10 = vsel %vm653_vm3, %v2493_v14, %v652_v22  ;;  %v519_v12 = vmul.f32 %v302_v23, %v302_v23 }
 0x138   :  { %v948_v39 = vpop.permute.xlu0 %947  ;;  %v2505_v4 = vadd.f32 %v1280_v56, %v1205_v7  ;;  %v657_v31 = vsel %vm655_vm4, %v656_v8, %v654_v10 }
 0x139   :  { %v1621_v11 = vpop.eup %1620  ;;  %v991_v16 = vsub.f32 %v2216_v0, %v948_v39  ;;  %v670_v39 = vand.u32 2147483648, %v2500_v63 }
 0x13a   :  { %v659_v36 = vmul.f32 %v1621_v11, %v636_v38  ;;  %1628 = vrsqrt.f32 %v2505_v4  ;;  %vm1355_vm12 = vcmp.eq.f32.partialorder %v2505_v4, inf  ;;  %vm1357_vm14 = vcmp.eq.f32.partialorder %v2505_v4, 0.0 }
 0x13b   :  { %v594_v43 = vpop.permute.xlu1 %593  ;;  %v1207_v14 = vmul.f32 %v991_v16, %v991_v16 }
 0x13c   :  { %v261_v32 = vpop.permute.xlu0 %260  ;;  %v1623_v42 = vpop.eup %1622  ;;  %v2512_v57 = vadd.f32 %v594_v43, %v518_v40  ;;  %v661_v58 = vsel %vm660_vm5, %v636_v38, %v659_v36 }
 0x13d   :  { %v1625_v60 = vpop.eup %1624  ;;  %v1347_v27 = vmul.f32 %v1623_v42, %v1324_v47  ;;  %v664_v54 = vsel %vm662_vm6, %v663_v26, %v661_v58  ;;  %v1358_v42 = vand.u32 2147483648, %v2505_v4 }
 0x13e   :  { %v1340_v46 = vmul.f32 %v1625_v60, %v1323_v48  ;;  %1630 = vrsqrt.f32 %v2512_v57  ;;  %vm674_vm15 = vcmp.eq.f32.partialorder %v2512_v57, inf  ;;  %vm676_vm1 = vcmp.eq.f32.partialorder %v2512_v57, 0.0 }
 0x13f   :  { %v1349_v20 = vsel %vm1348_vm7, %v1324_v47, %v1347_v27  ;;  %v1282_v30 = vpop.permute.xlu1 %1281 }
 0x140   :  { %v950_v55 = vpop.permute.xlu0 %949  ;;  %v1352_v35 = vsel %vm1350_vm8, %v1351_v28, %v1349_v20  ;;  %v1342_v50 = vsel %vm1341_vm9, %v1323_v48, %v1340_v46  ;;  %v1627_v49 = vpop.eup %1626  ;;  %v2520_v9 = vadd.f32 %v1282_v30, %v1206_v17  ;;  %v303_v17 = vsub.f32 %v2230_v29, %v261_v32 }
 0x141   :  { %v1452_v34 = vsub.f32 %v664_v54, %v1352_v35  ;;  %v1345_v7 = vsel %vm1343_vm10, %v1344_v3, %v1342_v50  ;;  %v666_v47 = vmul.f32 %v1627_v49, %v2500_v63  ;;  %v992_v29 = vsub.f32 %v2237_v5, %v950_v55 }
 0x142   :  { %v1451_v1 = vsub.f32 %v657_v31, %v1345_v7  ;;  %1632 = vrsqrt.f32 %v2520_v9  ;;  %v520_v46 = vmul.f32 %v303_v17, %v303_v17  ;;  %v677_v5 = vand.u32 2147483648, %v2512_v57 }
 0x143   :  { %v1468_v11 = vand.u32 2147483647, %v1452_v34  ;;  %v596_v56 = vpop.permute.xlu1 %595  ;;  %v668_v0 = vsel %vm667_vm11, %v2500_v63, %v666_v47  ;;  %vm1362_vm0 = vcmp.eq.f32.partialorder %v2520_v9, inf  ;;  %v1365_v49 = vand.u32 2147483648, %v2520_v9 }
 0x144   :  { %v263_v38 = vpop.permute.xlu0 %262  ;;  %v1467_v48 = vand.u32 2147483647, %v1451_v1  ;;  %v1629_v36 = vpop.eup %1628  ;;  %v2527_v40 = vadd.f32 %v596_v56, %v519_v12  ;;  %v671_v27 = vsel %vm669_vm13, %v670_v39, %v668_v0  ;;  %vm1364_vm2 = vcmp.eq.f32.partialorder %v2520_v9, 0.0 }
 0x145   :  { %1501 = vrot.lane.b32.xlu1 %v1468_v11, %s1759_s1  ;;  %v1354_v22 = vmul.f32 %v1629_v36, %v2505_v4  ;;  %v304_v35 = vsub.f32 %v2250_v59, %v263_v38 }
 0x146   :  { %1499 = vrot.lane.b32.xlu0 %v1467_v48, %s1759_s1  ;;  %1634 = vrsqrt.f32 %v2527_v40  ;;  %vm681_vm3 = vcmp.eq.f32.partialorder %v2527_v40, inf  ;;  %vm683_vm5 = vcmp.eq.f32.partialorder %v2527_v40, 0.0 }
 0x147   :  { %v1284_v43 = vpop.permute.xlu1 %1283  ;;  %v1356_v26 = vsel %vm1355_vm12, %v2505_v4, %v1354_v22  ;;  %v1208_v4 = vmul.f32 %v992_v29, %v992_v29  ;;  %v521_v11 = vmul.f32 %v304_v35, %v304_v35 }
 0x148   :  { %v952_v8 = vpop.permute.xlu0 %951  ;;  %v1631_v60 = vpop.eup %1630  ;;  %v1327_v58 = vadd.f32 %v1284_v43, %v1207_v14  ;;  %v1359_v28 = vsel %vm1357_vm14, %v1358_v42, %v1356_v26 }
 0x149   :  { %v1453_v32 = vsub.f32 %v671_v27, %v1359_v28  ;;  %v673_v10 = vmul.f32 %v1631_v60, %v2512_v57  ;;  %v993_v59 = vsub.f32 %v2260_v51, %v952_v8  ;;  %v684_v51 = vand.u32 2147483648, %v2527_v40 }
 0x14a   :  { %1636 = vrsqrt.f32 %v1327_v58  ;;  %vm1369_vm4 = vcmp.eq.f32.partialorder %v1327_v58, inf  ;;  %v1372_v8 = vand.u32 2147483648, %v1327_v58  ;;  %vm1371_vm6 = vcmp.eq.f32.partialorder %v1327_v58, 0.0 }
 0x14b   :  { %v598_v20 = vpop.permute.xlu1 %597  ;;  %v1469_v3 = vand.u32 2147483647, %v1453_v32  ;;  %v675_v54 = vsel %vm674_vm15, %v2512_v57, %v673_v10 }
 0x14c   :  { %v265_v23 = vpop.permute.xlu0 %264  ;;  %v1633_v30 = vpop.eup %1632  ;;  %v2544_v63 = vadd.f32 %v598_v20, %v520_v46  ;;  %v678_v1 = vsel %vm676_vm1, %v677_v5, %v675_v54 }
 0x14d   :  { %1503 = vrot.lane.b32.xlu0 %v1469_v3, %s1759_s1  ;;  %v1361_v55 = vmul.f32 %v1633_v30, %v2520_v9  ;;  %v305_v22 = vsub.f32 %v2274_v44, %v265_v23 }
 0x14e   :  { %1638 = vrsqrt.f32 %v2544_v63  ;;  %vm688_vm7 = vcmp.eq.f32.partialorder %v2544_v63, inf  ;;  %vm690_vm9 = vcmp.eq.f32.partialorder %v2544_v63, 0.0 }
 0x14f   :  { %v1286_v34 = vpop.permute.xlu1 %1285  ;;  %v1363_v31 = vsel %vm1362_vm0, %v2520_v9, %v1361_v55  ;;  %v1209_v9 = vmul.f32 %v993_v59, %v993_v59  ;;  %v522_v44 = vmul.f32 %v305_v22, %v305_v22 }
 0x150   :  { %v954_v50 = vpop.permute.xlu0 %953  ;;  %v1635_v7 = vpop.eup %1634  ;;  %v1328_v16 = vadd.f32 %v1286_v34, %v1208_v4  ;;  %v1366_v47 = vsel %vm1364_vm2, %v1365_v49, %v1363_v31 }
 0x151   :  { %v1454_v12 = vsub.f32 %v678_v1, %v1366_v47  ;;  %v680_v38 = vmul.f32 %v1635_v7, %v2527_v40  ;;  %v994_v29 = vsub.f32 %v2281_v52, %v954_v50  ;;  %v691_v52 = vand.u32 2147483648, %v2544_v63 }
 0x152   :  { %1640 = vrsqrt.f32 %v1328_v16  ;;  %vm1376_vm8 = vcmp.eq.f32.partialorder %v1328_v16, inf  ;;  %v1379_v55 = vand.u32 2147483648, %v1328_v16  ;;  %vm1378_vm10 = vcmp.eq.f32.partialorder %v1328_v16, 0.0 }
 0x153   :  { %v600_v48 = vpop.permute.xlu1 %599  ;;  %v1470_v36 = vand.u32 2147483647, %v1454_v12  ;;  %v682_v0 = vsel %vm681_vm3, %v2527_v40, %v680_v38  ;;  %v1210_v40 = vmul.f32 %v994_v29, %v994_v29 }
 0x154   :  { %v267_v56 = vpop.permute.xlu0 %266  ;;  %v1637_v14 = vpop.eup %1636  ;;  %v2560_v57 = vadd.f32 %v600_v48, %v521_v11  ;;  %v685_v27 = vsel %vm683_vm5, %v684_v51, %v682_v0 }
 0x155   :  { %1505 = vrot.lane.b32.xlu1 %v1470_v36, %s1759_s1  ;;  %v1368_v39 = vmul.f32 %v1637_v14, %v1327_v58  ;;  %v306_v54 = vsub.f32 %v2294_v62, %v267_v56 }
 0x156   :  { %1642 = vrsqrt.f32 %v2560_v57  ;;  %vm695_vm11 = vcmp.eq.f32.partialorder %v2560_v57, inf  ;;  %vm697_vm13 = vcmp.eq.f32.partialorder %v2560_v57, 0.0 }
 0x157   :  { %v1288_v42 = vpop.permute.xlu1 %1287  ;;  %v1370_v43 = vsel %vm1369_vm4, %v1327_v58, %v1368_v39  ;;  %v523_v62 = vmul.f32 %v306_v54, %v306_v54 }
 0x158   :  { %v956_v17 = vpop.permute.xlu0 %955  ;;  %v1639_v26 = vpop.eup %1638  ;;  %v1329_v60 = vadd.f32 %v1288_v42, %v1209_v9  ;;  %v1373_v28 = vsel %vm1371_vm6, %v1372_v8, %v1370_v43 }
 0x159   :  { %v1455_v32 = vsub.f32 %v685_v27, %v1373_v28  ;;  %v687_v10 = vmul.f32 %v1639_v26, %v2544_v63  ;;  %v995_v1 = vsub.f32 %v2306_v18, %v956_v17  ;;  %v698_v18 = vand.u32 2147483648, %v2560_v57 }
 0x15a   :  { %1644 = vrsqrt.f32 %v1329_v60  ;;  %vm1383_vm12 = vcmp.eq.f32.partialorder %v1329_v60, inf  ;;  %v1386_v0 = vand.u32 2147483648, %v1329_v60  ;;  %vm1385_vm14 = vcmp.eq.f32.partialorder %v1329_v60, 0.0 }
 0x15b   :  { %v602_v23 = vpop.permute.xlu1 %601  ;;  %v1471_v20 = vand.u32 2147483647, %v1455_v32  ;;  %v689_v58 = vsel %vm688_vm7, %v2544_v63, %v687_v10  ;;  %v1211_v63 = vmul.f32 %v995_v1, %v995_v1 }
 0x15c   :  { %v269_v46 = vpop.permute.xlu0 %268  ;;  %v1641_v3 = vpop.eup %1640  ;;  %v2571_v30 = vadd.f32 %v602_v23, %v522_v44  ;;  %v692_v31 = vsel %vm690_vm9, %v691_v52, %v689_v58 }
 0x15d   :  { %1507 = vrot.lane.b32.xlu0 %v1471_v20, %s1759_s1  ;;  %v1375_v4 = vmul.f32 %v1641_v3, %v1328_v16  ;;  %v307_v14 = vsub.f32 %v2325_v15, %v269_v46 }
 0x15e   :  { %1646 = vrsqrt.f32 %v2571_v30  ;;  %vm702_vm15 = vcmp.eq.f32.partialorder %v2571_v30, inf  ;;  %vm704_vm1 = vcmp.eq.f32.partialorder %v2571_v30, 0.0 }
 0x15f   :  { %v1290_v35 = vpop.permute.xlu1 %1289  ;;  %v1377_v50 = vsel %vm1376_vm8, %v1328_v16, %v1375_v4  ;;  %v524_v15 = vmul.f32 %v307_v14, %v307_v14 }
 0x160   :  { %v958_v5 = vpop.permute.xlu0 %957  ;;  %v1643_v49 = vpop.eup %1642  ;;  %v1330_v34 = vadd.f32 %v1290_v35, %v1210_v40  ;;  %v1380_v7 = vsel %vm1378_vm10, %v1379_v55, %v1377_v50 }
 0x161   :  { %v1456_v47 = vsub.f32 %v692_v31, %v1380_v7  ;;  %v694_v59 = vmul.f32 %v1643_v49, %v2560_v57  ;;  %v996_v43 = vsub.f32 %v2332_v53, %v958_v5  ;;  %v705_v53 = vand.u32 2147483648, %v2571_v30 }
 0x162   :  { %1648 = vrsqrt.f32 %v1330_v34  ;;  %vm1390_vm0 = vcmp.eq.f32.partialorder %v1330_v34, inf  ;;  %v1393_v3 = vand.u32 2147483648, %v1330_v34  ;;  %vm1392_vm2 = vcmp.eq.f32.partialorder %v1330_v34, 0.0 }
 0x163   :  { %v604_v38 = vpop.permute.xlu1 %603  ;;  %v1472_v11 = vand.u32 2147483647, %v1456_v47  ;;  %v696_v16 = vsel %vm695_vm11, %v2560_v57, %v694_v59  ;;  %v1212_v57 = vmul.f32 %v996_v43, %v996_v43 }
 0x164   :  { %v271_v12 = vpop.permute.xlu0 %270  ;;  %v1645_v56 = vpop.eup %1644  ;;  %v2582_v48 = vadd.f32 %v604_v38, %v523_v62  ;;  %v699_v8 = vsel %vm697_vm13, %v698_v18, %v696_v16 }
 0x165   :  { %1509 = vrot.lane.b32.xlu1 %v1472_v11, %s1759_s1  ;;  %v1382_v36 = vmul.f32 %v1645_v56, %v1329_v60  ;;  %v308_v23 = vsub.f32 %v2348_v33, %v271_v12 }
 0x166   :  { %1650 = vrsqrt.f32 %v2582_v48  ;;  %vm709_vm3 = vcmp.eq.f32.partialorder %v2582_v48, inf  ;;  %vm711_vm5 = vcmp.eq.f32.partialorder %v2582_v48, 0.0 }
 0x167   :  { %v1292_v51 = vpop.permute.xlu1 %1291  ;;  %v1384_v39 = vsel %vm1383_vm12, %v1329_v60, %v1382_v36  ;;  %v525_v33 = vmul.f32 %v308_v23, %v308_v23 }
 0x168   :  { %v960_v9 = vpop.permute.xlu0 %959  ;;  %v1647_v22 = vpop.eup %1646  ;;  %v1331_v17 = vadd.f32 %v1292_v51, %v1211_v63  ;;  %v1387_v42 = vsel %vm1385_vm14, %v1386_v0, %v1384_v39 }
 0x169   :  { %v1457_v26 = vsub.f32 %v699_v8, %v1387_v42  ;;  %v701_v27 = vmul.f32 %v1647_v22, %v2571_v30  ;;  %v997_v55 = vsub.f32 %v2361_v19, %v960_v9  ;;  %v712_v19 = vand.u32 2147483648, %v2582_v48 }
 0x16a   :  { %1652 = vrsqrt.f32 %v1331_v17  ;;  %vm1397_vm4 = vcmp.eq.f32.partialorder %v1331_v17, inf  ;;  %v1400_v38 = vand.u32 2147483648, %v1331_v17  ;;  %vm1399_vm6 = vcmp.eq.f32.partialorder %v1331_v17, 0.0 }
 0x16b   :  { %v606_v29 = vpop.permute.xlu1 %605  ;;  %v1473_v32 = vand.u32 2147483647, %v1457_v26  ;;  %v703_v60 = vsel %vm702_vm15, %v2571_v30, %v701_v27  ;;  %v1213_v30 = vmul.f32 %v997_v55, %v997_v55 }
 0x16c   :  { %v273_v28 = vpop.permute.xlu0 %272  ;;  %v1649_v10 = vpop.eup %1648  ;;  %v2593_v44 = vadd.f32 %v606_v29, %v524_v15  ;;  %v706_v54 = vsel %vm704_vm1, %v705_v53, %v703_v60 }
 0x16d   :  { %1511 = vrot.lane.b32.xlu0 %v1473_v32, %s1759_s1  ;;  %v1389_v46 = vmul.f32 %v1649_v10, %v1330_v34  ;;  %v309_v62 = vsub.f32 %v2377_v37, %v273_v28 }
 0x16e   :  { %1654 = vrsqrt.f32 %v2593_v44  ;;  %vm716_vm7 = vcmp.eq.f32.partialorder %v2593_v44, inf  ;;  %vm718_vm9 = vcmp.eq.f32.partialorder %v2593_v44, 0.0 }
 0x16f   :  { %v1294_v40 = vpop.permute.xlu1 %1293  ;;  %v1391_v58 = vsel %vm1390_vm0, %v1330_v34, %v1389_v46  ;;  %v526_v37 = vmul.f32 %v309_v62, %v309_v62 }
 0x170   :  { %v962_v20 = vpop.permute.xlu0 %961  ;;  %v1651_v52 = vpop.eup %1650  ;;  %v1332_v4 = vadd.f32 %v1294_v40, %v1212_v57  ;;  %v1394_v5 = vsel %vm1392_vm2, %v1393_v3, %v1391_v58 }
 0x171   :  { %v1458_v35 = vsub.f32 %v706_v54, %v1394_v5  ;;  %v708_v50 = vmul.f32 %v1651_v52, %v2582_v48  ;;  %v998_v14 = vsub.f32 %v2384_v41, %v962_v20  ;;  %v719_v41 = vand.u32 2147483648, %v2593_v44 }
 0x172   :  { %1656 = vrsqrt.f32 %v1332_v4  ;;  %vm1404_vm8 = vcmp.eq.f32.partialorder %v1332_v4, inf  ;;  %v1407_v15 = vand.u32 2147483648, %v1332_v4  ;;  %vm1406_vm10 = vcmp.eq.f32.partialorder %v1332_v4, 0.0 }
 0x173   :  { %v608_v31 = vpop.permute.xlu1 %607  ;;  %v1474_v7 = vand.u32 2147483647, %v1458_v35  ;;  %v710_v34 = vsel %vm709_vm3, %v2582_v48, %v708_v50  ;;  %v1214_v48 = vmul.f32 %v998_v14, %v998_v14 }
 0x174   :  { %v275_v49 = vpop.permute.xlu0 %274  ;;  %v1653_v1 = vpop.eup %1652  ;;  %v2604_v47 = vadd.f32 %v608_v31, %v525_v33  ;;  %v713_v18 = vsel %vm711_vm5, %v712_v19, %v710_v34 }
 0x175   :  { %1513 = vrot.lane.b32.xlu1 %v1474_v7, %s1759_s1  ;;  %v1396_v59 = vmul.f32 %v1653_v1, %v1331_v17  ;;  %v310_v26 = vsub.f32 %v2398_v61, %v275_v49 }
 0x176   :  { %1658 = vrsqrt.f32 %v2604_v47  ;;  %vm723_vm11 = vcmp.eq.f32.partialorder %v2604_v47, inf  ;;  %vm725_vm13 = vcmp.eq.f32.partialorder %v2604_v47, 0.0 }
 0x177   :  { %v1296_v11 = vpop.permute.xlu1 %1295  ;;  %v1398_v56 = vsel %vm1397_vm4, %v1331_v17, %v1396_v59  ;;  %v527_v23 = vmul.f32 %v310_v26, %v310_v26 }
 0x178   :  { %v964_v12 = vpop.permute.xlu0 %963  ;;  %v1655_v63 = vpop.eup %1654  ;;  %v1333_v16 = vadd.f32 %v1296_v11, %v1213_v30  ;;  %v1401_v36 = vsel %vm1399_vm6, %v1400_v38, %v1398_v56 }
 0x179   :  { %v1459_v9 = vsub.f32 %v713_v18, %v1401_v36  ;;  %v715_v0 = vmul.f32 %v1655_v63, %v2593_v44  ;;  %v999_v53 = vsub.f32 %v2411_v21, %v964_v12  ;;  %v726_v21 = vand.u32 2147483648, %v2604_v47 }
 0x17a   :  { %1660 = vrsqrt.f32 %v1333_v16  ;;  %vm1411_vm12 = vcmp.eq.f32.partialorder %v1333_v16, inf  ;;  %v1414_v35 = vand.u32 2147483648, %v1333_v16  ;;  %vm1413_vm14 = vcmp.eq.f32.partialorder %v1333_v16, 0.0 }
 0x17b   :  { %v610_v39 = vpop.permute.xlu1 %609  ;;  %v1475_v22 = vand.u32 2147483647, %v1459_v9  ;;  %v717_v17 = vsel %vm716_vm7, %v2593_v44, %v715_v0  ;;  %v1215_v52 = vmul.f32 %v999_v53, %v999_v53 }
 0x17c   :  { %v277_v51 = vpop.permute.xlu0 %276  ;;  %v1657_v8 = vpop.eup %1656  ;;  %v2615_v42 = vadd.f32 %v610_v39, %v526_v37  ;;  %v720_v57 = vsel %vm718_vm9, %v719_v41, %v717_v17 }
 0x17d   :  { %1515 = vrot.lane.b32.xlu0 %v1475_v22, %s1759_s1  ;;  %v1403_v43 = vmul.f32 %v1657_v8, %v1332_v4  ;;  %v311_v5 = vsub.f32 %v2425_v45, %v277_v51 }
 0x17e   :  { %1662 = vrsqrt.f32 %v2615_v42  ;;  %vm730_vm15 = vcmp.eq.f32.partialorder %v2615_v42, inf  ;;  %v733_v63 = vand.u32 2147483648, %v2615_v42  ;;  %vm732_vm1 = vcmp.eq.f32.partialorder %v2615_v42, 0.0 }
 0x17f   :  { %v1298_v28 = vpop.permute.xlu1 %1297  ;;  %v1405_v29 = vsel %vm1404_vm8, %v1332_v4, %v1403_v43  ;;  %v528_v19 = vmul.f32 %v311_v5, %v311_v5 }
 0x180   :  { %v966_v27 = vpop.permute.xlu0 %965  ;;  %v1659_v32 = vpop.eup %1658  ;;  %v2624_v10 = vadd.f32 %v1298_v28, %v1214_v48  ;;  %v1408_v60 = vsel %vm1406_vm10, %v1407_v15, %v1405_v29 }
 0x181   :  { %v1460_v46 = vsub.f32 %v720_v57, %v1408_v60  ;;  %v722_v61 = vmul.f32 %v1659_v32, %v2604_v47  ;;  %v1000_v45 = vsub.f32 %v2432_v24, %v966_v27 }
 0x182   :  { %1664 = vrsqrt.f32 %v2624_v10  ;;  %vm1418_vm0 = vcmp.eq.f32.partialorder %v2624_v10, inf  ;;  %v1421_v36 = vand.u32 2147483648, %v2624_v10  ;;  %vm1420_vm2 = vcmp.eq.f32.partialorder %v2624_v10, 0.0 }
 0x183   :  { %v612_v3 = vpop.permute.xlu1 %611  ;;  %v1476_v40 = vand.u32 2147483647, %v1460_v46  ;;  %v724_v4 = vsel %vm723_vm11, %v2604_v47, %v722_v61 }
 0x184   :  { %v279_v20 = vpop.permute.xlu0 %278  ;;  %v1661_v58 = vpop.eup %1660  ;;  %v2629_v44 = vadd.f32 %v612_v3, %v527_v23  ;;  %v727_v7 = vsel %vm725_vm13, %v726_v21, %v724_v4 }
 0x185   :  { %1517 = vrot.lane.b32.xlu1 %v1476_v40, %s1759_s1  ;;  %v1410_v54 = vmul.f32 %v1661_v58, %v1333_v16  ;;  %v312_v11 = vsub.f32 %v2448_v2, %v279_v20 }
 0x186   :  { %1666 = vrsqrt.f32 %v2629_v44  ;;  %vm737_vm3 = vcmp.eq.f32.partialorder %v2629_v44, inf  ;;  %v740_v57 = vand.u32 2147483648, %v2629_v44  ;;  %vm739_vm5 = vcmp.eq.f32.partialorder %v2629_v44, 0.0 }
 0x187   :  { %v1300_v50 = vpop.permute.xlu1 %1299  ;;  %v1412_v33 = vsel %vm1411_vm12, %v1333_v16, %v1410_v54  ;;  %v1216_v16 = vmul.f32 %v1000_v45, %v1000_v45  ;;  %v529_v22 = vmul.f32 %v312_v11, %v312_v11 }
 0x188   :  { %v968_v55 = vpop.permute.xlu0 %967  ;;  %v1663_v49 = vpop.eup %1662  ;;  %v2638_v31 = vadd.f32 %v1300_v50, %v1215_v52  ;;  %v1415_v1 = vsel %vm1413_vm14, %v1414_v35, %v1412_v33 }
 0x189   :  { %v1461_v30 = vsub.f32 %v727_v7, %v1415_v1  ;;  %v729_v34 = vmul.f32 %v1663_v49, %v2615_v42  ;;  %v1001_v0 = vsub.f32 %v2459_v13, %v968_v55 }
 0x18a   :  { %1668 = vrsqrt.f32 %v2638_v31  ;;  %vm1425_vm4 = vcmp.eq.f32.partialorder %v2638_v31, inf  ;;  %vm1427_vm6 = vcmp.eq.f32.partialorder %v2638_v31, 0.0 }
 0x18b   :  { %v614_v62 = vpop.permute.xlu1 %613  ;;  %v1477_v12 = vand.u32 2147483647, %v1461_v30  ;;  %v731_v56 = vsel %vm730_vm15, %v2615_v42, %v729_v34  ;;  %v1217_v27 = vmul.f32 %v1001_v0, %v1001_v0 }
 0x18c   :  { %v281_v59 = vpop.permute.xlu0 %280  ;;  %v1665_v38 = vpop.eup %1664  ;;  %v2643_v47 = vadd.f32 %v614_v62, %v528_v19  ;;  %v734_v51 = vsel %vm732_vm1, %v733_v63, %v731_v56 }
 0x18d   :  { %1519 = vrot.lane.b32.xlu0 %v1477_v12, %s1759_s1  ;;  %v1417_v24 = vmul.f32 %v1665_v38, %v2624_v10  ;;  %v313_v8 = vsub.f32 %v2470_v25, %v281_v59 }
 0x18e   :  { %1670 = vrsqrt.f32 %v2643_v47  ;;  %vm744_vm7 = vcmp.eq.f32.partialorder %v2643_v47, inf  ;;  %v747_v5 = vand.u32 2147483648, %v2643_v47  ;;  %vm746_vm9 = vcmp.eq.f32.partialorder %v2643_v47, 0.0 }
 0x18f   :  { %v1302_v14 = vpop.permute.xlu1 %1301  ;;  %v1419_v2 = vsel %vm1418_vm0, %v2624_v10, %v1417_v24  ;;  %v530_v13 = vmul.f32 %v313_v8, %v313_v8 }
 0x190   :  { %v970_v18 = vpop.permute.xlu0 %969  ;;  %v1667_v9 = vpop.eup %1666  ;;  %v1336_v37 = vadd.f32 %v1302_v14, %v1216_v16  ;;  %v1422_v39 = vsel %vm1420_vm2, %v1421_v36, %v1419_v2 }
 0x191   :  { %v1462_v48 = vsub.f32 %v734_v51, %v1422_v39  ;;  %v736_v17 = vmul.f32 %v1667_v9, %v2629_v44  ;;  %v1002_v15 = vsub.f32 %v2478_v6, %v970_v18  ;;  %v1428_v6 = vand.u32 2147483648, %v2638_v31 }
 0x192   :  { %1672 = vrsqrt.f32 %v1336_v37  ;;  %vm1432_vm8 = vcmp.eq.f32.partialorder %v1336_v37, inf  ;;  %v1435_v55 = vand.u32 2147483648, %v1336_v37  ;;  %vm1434_vm10 = vcmp.eq.f32.partialorder %v1336_v37, 0.0 }
 0x193   :  { %v1478_v42 = vand.u32 2147483647, %v1462_v48  ;;  %v738_v28 = vsel %vm737_vm3, %v2629_v44, %v736_v17  ;;  %v1218_v61 = vmul.f32 %v1002_v15, %v1002_v15  ;;  %vm1549_vm3 = vcmask 111616  }
 0x194   :  { %v616_v41 = vpop.permute.xlu0 %615  ;;  %v1669_v26 = vpop.eup %1668  ;;  %v741_v23 = vsel %vm739_vm5, %v740_v57, %v738_v28  ;;  %vm1590_vm5 = vcmask 0  }
 0x195   :  { %v2660_v43 = vadd.f32 %v616_v41, %v529_v22  ;;  %1521 = vrot.lane.b32.xlu1 %v1478_v42, %s1759_s1  ;;  %v1424_v29 = vmul.f32 %v1669_v26, %v2638_v31 }
 0x197   :  { %1674 = vrsqrt.f32 %v2660_v43  ;;  %v1304_v25 = vpop.permute.xlu1 %1303  ;;  %v1426_v53 = vsel %vm1425_vm4, %v2638_v31, %v1424_v29  ;;  %vm751_vm11 = vcmp.eq.f32.partialorder %v2660_v43, inf  ;;  %v754_v59 = vand.u32 2147483648, %v2660_v43 }
 0x198   :  { %v1337_v32 = vadd.f32 %v1304_v25, %v1217_v27  ;;  %v618_v10 = vpop.permute.xlu0 %617  ;;  %v1671_v46 = vpop.eup %1670  ;;  %v1429_v20 = vsel %vm1427_vm6, %v1428_v6, %v1426_v53  ;;  %vm753_vm13 = vcmp.eq.f32.partialorder %v2660_v43, 0.0  ;;  %vm1547_vm4 = vcmask 113664  }
 0x199   :  { %v650_v60 = vadd.f32 %v618_v10, %v530_v13  ;;  %v1463_v40 = vsub.f32 %v741_v23, %v1429_v20  ;;  %v743_v58 = vmul.f32 %v1671_v46, %v2643_v47 }
 0x19a   :  { %1676 = vrsqrt.f32 %v1337_v32  ;;  %vm1439_vm12 = vcmp.eq.f32.partialorder %v1337_v32, inf  ;;  %v1442_v62 = vand.u32 2147483648, %v1337_v32  ;;  %vm1441_vm14 = vcmp.eq.f32.partialorder %v1337_v32, 0.0 }
 0x19b   :  { %1678 = vrsqrt.f32 %v650_v60  ;;  %v1306_v3 = vpop.permute.xlu1 %1305  ;;  %v1479_v4 = vand.u32 2147483647, %v1463_v40  ;;  %v745_v44 = vsel %vm744_vm7, %v2643_v47, %v743_v58  ;;  %vm758_vm15 = vcmp.eq.f32.partialorder %v650_v60, inf }
 0x19c   :  { %v1338_v52 = vadd.f32 %v1306_v3, %v1218_v61  ;;  %v1673_v21 = vpop.eup %1672  ;;  %v748_v33 = vsel %vm746_vm9, %v747_v5, %v745_v44  ;;  %v761_v18 = vand.u32 2147483648, %v650_v60  ;;  %vm760_vm1 = vcmp.eq.f32.partialorder %v650_v60, 0.0 }
 0x19d   :  { %1523 = vrot.lane.b32.xlu0 %v1479_v4, %s1759_s1  ;;  %v1431_v54 = vmul.f32 %v1673_v21, %v1336_v37 }
 0x19e   :  { %1680 = vrsqrt.f32 %v1338_v52  ;;  %vm1446_vm0 = vcmp.eq.f32.partialorder %v1338_v52, inf  ;;  %v1449_v36 = vand.u32 2147483648, %v1338_v52  ;;  %vm1448_vm2 = vcmp.eq.f32.partialorder %v1338_v52, 0.0 }
 0x19f   :  { %v1433_v50 = vsel %vm1432_vm8, %v1336_v37, %v1431_v54 }
 0x1a0   :  { %v1436_v49 = vsel %vm1434_vm10, %v1435_v55, %v1433_v50 }
 0x1a1   :  { %v1675_v35 = vpop.eup %1674  ;;  %v1464_v7 = vsub.f32 %v748_v33, %v1436_v49 }
 0x1a2   :  { %v750_v31 = vmul.f32 %v1675_v35, %v2660_v43 }
 0x1a3   :  { %v1480_v34 = vand.u32 2147483647, %v1464_v7 }
 0x1a4   :  { %v1677_v1 = vpop.eup %1676  ;;  %v752_v19 = vsel %vm751_vm11, %v2660_v43, %v750_v31 }
 0x1a5   :  { %v1679_v30 = vpop.eup %1678  ;;  %v1438_v45 = vmul.f32 %v1677_v1, %v1337_v32  ;;  %1525 = vrot.lane.b32.xlu1 %v1480_v34, %s1759_s1  ;;  %v755_v11 = vsel %vm753_vm13, %v754_v59, %v752_v19 }
 0x1a6   :  { %v757_v12 = vmul.f32 %v1679_v30, %v650_v60 }
 0x1a7   :  { %v1440_v38 = vsel %vm1439_vm12, %v1337_v32, %v1438_v45 }
 0x1a8   :  { %v1681_v47 = vpop.eup %1680  ;;  %v1443_v56 = vsel %vm1441_vm14, %v1442_v62, %v1440_v38  ;;  %v759_v24 = vsel %vm758_vm15, %v650_v60, %v757_v12 }
 0x1a9   :  { %v1465_v63 = vsub.f32 %v755_v11, %v1443_v56  ;;  %v1445_v16 = vmul.f32 %v1681_v47, %v1338_v52  ;;  %v762_v9 = vsel %vm760_vm1, %v761_v18, %v759_v24 }
 0x1ab   :  { %v1481_v14 = vand.u32 2147483647, %v1465_v63  ;;  %v1447_v2 = vsel %vm1446_vm0, %v1338_v52, %v1445_v16 }
 0x1ac   :  { %v1450_v0 = vsel %vm1448_vm2, %v1449_v36, %v1447_v2 }
 0x1ad   :  { %1527 = vrot.lane.b32.xlu0 %v1481_v14, %s1759_s1  ;;  %v1466_v37 = vsub.f32 %v762_v9, %v1450_v0 }
 0x1af   :  { %v1482_v51 = vand.u32 2147483647, %v1466_v37 }
 0x1b1   :  { %1529 = vrot.lane.b32.xlu1 %v1482_v51, %s1759_s1 }
 0x1b7   :  { %v1502_v22 = vpop.permute.xlu1 %1501 }
 0x1b8   :  { %v1500_v39 = vpop.permute.xlu0 %1499  ;;  %v1550_v48 = vsel %vm1549_vm3, %v1502_v22, 0.0 }
 0x1b9   :  { %v1548_v17 = vsel %vm1547_vm4, %v1500_v39, 0.0 }
 0x1ba   :  { %v1551_v42 = vadd.f32 %v1550_v48, %v1548_v17 }
 0x1bf   :  { %v1504_v8 = vpop.permute.xlu0 %1503 }
 0x1c0   :  { %v1552_v43 = vsel %vm1547_vm4, %v1504_v8, 0.0 }
 0x1c1   :  { %v1553_v15 = vadd.f32 %v1552_v43, %v1551_v42 }
 0x1c7   :  { %v1506_v41 = vpop.permute.xlu1 %1505 }
 0x1c8   :  { %v1554_v27 = vsel %vm1549_vm3, %v1506_v41, 0.0 }
 0x1c9   :  { %v1555_v28 = vadd.f32 %v1554_v27, %v1553_v15 }
 0x1cf   :  { %v1508_v26 = vpop.permute.xlu0 %1507 }
 0x1d0   :  { %v1556_v25 = vsel %vm1547_vm4, %v1508_v26, 0.0 }
 0x1d1   :  { %v1557_v10 = vadd.f32 %v1556_v25, %v1555_v28 }
 0x1d7   :  { %v1510_v13 = vpop.permute.xlu1 %1509 }
 0x1d8   :  { %v1558_v32 = vsel %vm1549_vm3, %v1510_v13, 0.0 }
 0x1d9   :  { %v1559_v60 = vadd.f32 %v1558_v32, %v1557_v10 }
 0x1df   :  { %v1512_v29 = vpop.permute.xlu0 %1511 }
 0x1e0   :  { %v1560_v6 = vsel %vm1547_vm4, %v1512_v29, 0.0 }
 0x1e1   :  { %v1561_v61 = vadd.f32 %v1560_v6, %v1559_v60 }
 0x1e7   :  { %v1514_v57 = vpop.permute.xlu1 %1513 }
 0x1e8   :  { %v1562_v46 = vsel %vm1549_vm3, %v1514_v57, 0.0 }
 0x1e9   :  { %v1563_v3 = vadd.f32 %v1562_v46, %v1561_v61 }
 0x1ef   :  { %v1516_v53 = vpop.permute.xlu0 %1515 }
 0x1f0   :  { %v1564_v20 = vsel %vm1547_vm4, %v1516_v53, 0.0 }
 0x1f1   :  { %v1565_v52 = vadd.f32 %v1564_v20, %v1563_v3 }
 0x1f7   :  { %v1518_v23 = vpop.permute.xlu1 %1517 }
 0x1f8   :  { %v1566_v58 = vsel %vm1549_vm3, %v1518_v23, 0.0 }
 0x1f9   :  { %v1567_v44 = vadd.f32 %v1566_v58, %v1565_v52 }
 0x1ff   :  { %v1520_v40 = vpop.permute.xlu0 %1519 }
 0x200   :  { %v1568_v21 = vsel %vm1547_vm4, %v1520_v40, 0.0 }
 0x201   :  { %v1569_v55 = vadd.f32 %v1568_v21, %v1567_v44 }
 0x207   :  { %v1522_v4 = vpop.permute.xlu1 %1521 }
 0x208   :  { %v1570_v5 = vsel %vm1549_vm3, %v1522_v4, 0.0 }
 0x209   :  { %v1571_v33 = vadd.f32 %v1570_v5, %v1569_v55 }
 0x20f   :  { %v1524_v54 = vpop.permute.xlu0 %1523 }
 0x210   :  { %v1572_v50 = vsel %vm1547_vm4, %v1524_v54, 0.0 }
 0x211   :  { %v1573_v31 = vadd.f32 %v1572_v50, %v1571_v33 }
 0x217   :  { %v1526_v35 = vpop.permute.xlu1 %1525 }
 0x218   :  { %v1574_v49 = vsel %vm1549_vm3, %v1526_v35, 0.0 }
 0x219   :  { %v1575_v30 = vadd.f32 %v1574_v49, %v1573_v31 }
 0x21f   :  { %v1528_v7 = vpop.permute.xlu0 %1527 }
 0x220   :  { %v1576_v1 = vsel %vm1547_vm4, %v1528_v7, 0.0 }
 0x221   :  { %v1577_v34 = vadd.f32 %v1576_v1, %v1575_v30 }
 0x223   :  { %v1530_v19 = vpop.permute.xlu1 %1529 }
 0x224   :  { %v1578_v45 = vsel %vm1549_vm3, %v1530_v19, 0.0 }
 0x225   :  { %v1579_v59 = vadd.f32 %v1578_v45, %v1577_v34 }
 0x227   :  { %1580 = vadd.xlane.f32.xlu0 %v1579_v59 }
 0x2b4   :  { %v1581_v62 = vpop.xlane.xlu0 %1580 }
 0x2b5   :  { %v1582_v12 = vrot.slane %v1581_v62, 4 }
 0x2b7   :  { %v1583_v38 = vadd.f32 %v1582_v12, %v1581_v62 }
 0x2b9   :  { %v1584_v47 = vrot.slane %v1583_v38, 2 }
 0x2bb   :  { %v1585_v11 = vadd.f32 %v1584_v47, %v1583_v38 }
 0x2bd   :  { %v1586_v56 = vrot.slane %v1585_v11, 1 }
 0x2bf   :  { %v1587_v63 = vadd.f32 %v1586_v56, %v1585_v11 }
 0x2c1   :  { %1608 = vpush %v1587_v63 }
 0x2f2   :  { %s1609_s10 = spop %1608 }
 0x2f3   :  { %v1589_v24 = vstv %s1609_s10 }
 0x2f4   :  { %1591 = vst.msk [vmem:[#allocation7] sm:$0x1] %vm1590_vm5, %v1589_v24 }
 0x2f5   :  { %1737 = shalt.err (!%p1734_p6)
}
 0x2f6   :  { %s1738_s15 = scalar_lea.hbm %s2718_s2, 16 }
 0x2f7   :  { %p1739_p7 = scmp.ne.s32.totalorder %s2718_s2, %s1738_s15  ;;  %p1742_p8 = scmp.lt.u32.totalorder %s1738_s15, %s2718_s2 }
 0x2f9   :  { %p1744_p9 = pnand %p1742_p8, %p1739_p7 }
 0x2fb   :  { %1747 = shalt.err (!%p1744_p9)
}
 0x2fc   :  { %1601 = dma.vmem_to_hbm [thread:$0]  %s1599_s9, 16, %s2718_s2, [#allocation4]  }
 0x2fd   :  { %1752 = dma.done.wait [#allocation4], 16  }
 0x2fe   :  { %1753 = vsyncadd [#allocation4], 4294967280 }
 0x2ff   :  { %1605 = vsyncpa [#allocation3], 1 }
 0x300   :  { %1606 = vsyncpa [#allocation6], 1 }
 0x301   :  { %1607 = vsyncpa [#allocation4], 1 }

</bundles_post_ra>
